<compile_context>
chip_gen: v7x
topology: tpu7x:2x2x1
jax: 0.10.0
libtpu: 0.0.40
codegen_flags: <defaults>
</compile_context>

<pallas_src>
import functools

import jax
import jax.numpy as jnp
from jax import lax
from jax.experimental import pallas as pl
from jax.experimental.pallas import tpu as pltpu

# ---------------------------- model config ----------------------------

VOCAB = 64
MAX_POS = 16
TYPE_VOCAB = 2
HIDDEN = 32          # stands in for hidden_size=768 at small scale
N_HEADS = 2
HEAD_DIM = HIDDEN // N_HEADS
FFN = 4 * HIDDEN
N_LAYERS = 2
NUM_CLASSES = 3
CLASS_PAD = 128      # lane-dense logits output (sliced back to NUM_CLASSES in JAX)
LN_EPS = 1e-12
DR_RATE = None       # mirrors BertClassifier(dr_rate=None): dropout branch skipped


# ---------------------------- kernel helpers ----------------------------


def _layernorm(x, g, b, eps):
    """LayerNorm in f32 (statistics and affine stay full precision)."""
    mu = jnp.mean(x, axis=-1, keepdims=True)
    var = jnp.mean((x - mu) ** 2, axis=-1, keepdims=True)
    return (x - mu) * lax.rsqrt(var + eps) * g + b


def _bf16(x):
    return x.astype(jnp.bfloat16)


# ---------------------------- fused encoder-layer kernel ----------------------------


def _encoder_layer_kernel(*refs, num_heads, head_dim, eps, apply_in_ln, apply_pool):
    """One full BERT encoder layer for a (B_blk, S, H) row block, entirely in VMEM.

    Optional prologue: embedding LayerNorm.  Optional epilogue: pooler + classifier
    (in which case the only output is the lane-dense logits block).
    """
    it = iter(refs)
    h_ref = next(it)
    bias_ref = next(it)
    if apply_in_ln:
        embg_ref = next(it)
        embb_ref = next(it)
    wqkv_ref = next(it); bqkv_ref = next(it)
    wo_ref = next(it); bo_ref = next(it)
    ln1g_ref = next(it); ln1b_ref = next(it)
    w1_ref = next(it); b1_ref = next(it)
    w2_ref = next(it); b2_ref = next(it)
    ln2g_ref = next(it); ln2b_ref = next(it)
    if apply_pool:
        wp_ref = next(it); bp_ref = next(it)
        wc_ref = next(it); bc_ref = next(it)
    o_ref = next(it)

    b_blk, seq, hidden = h_ref.shape
    rows = b_blk * seq
    scale = 1.0 / (head_dim ** 0.5)

    # --- flatten the whole row block; optional fused embedding LayerNorm prologue ---
    x = h_ref[...].reshape(rows, hidden)                     # f32 [rows, H]
    if apply_in_ln:
        x = _layernorm(x, embg_ref[...], embb_ref[...], eps)

    bias = bias_ref[...]                                     # f32 [b_blk, 1, S]

    # --- fused QKV projection: one wide bf16 MXU matmul, f32 accumulate ---
    qkv = jnp.dot(_bf16(x), wqkv_ref[...],
                  preferred_element_type=jnp.float32) + bqkv_ref[...]   # [rows, 3H]

    # --- self-attention per head; contexts placed into their lane range (no serial adds) ---
    ctx_cols = []
    for hh in range(num_heads):
        lo = hh * head_dim
        q_h = qkv[:, lo:lo + head_dim].reshape(b_blk, seq, head_dim)
        k_h = qkv[:, hidden + lo:hidden + lo + head_dim].reshape(b_blk, seq, head_dim)
        v_h = qkv[:, 2 * hidden + lo:2 * hidden + lo + head_dim].reshape(b_blk, seq, head_dim)
        s = jnp.einsum('bqd,bkd->bqk', _bf16(q_h), _bf16(k_h),
                       preferred_element_type=jnp.float32) * scale
        s = s + bias                                         # mask bias in f32
        s = s - jnp.max(s, axis=-1, keepdims=True)
        p = jnp.exp(s)
        p = p * pl.reciprocal(jnp.sum(p, axis=-1, keepdims=True), approx=True)
        ctx_h = jnp.einsum('bqk,bkd->bqd', _bf16(p), _bf16(v_h),
                           preferred_element_type=jnp.float32)
        ctx_cols.append(ctx_h.reshape(rows, head_dim))
    ctx = jnp.concatenate(ctx_cols, axis=-1)                 # lane placement only, [rows, H]

    # --- output projection (single K=H matmul) + bias + residual + LayerNorm ---
    attn = jnp.dot(_bf16(ctx), wo_ref[...], preferred_element_type=jnp.float32) + bo_ref[...]
    h1 = _layernorm(attn + x, ln1g_ref[...], ln1b_ref[...], eps)

    # --- FFN: [rows, 4H] intermediate never leaves VMEM ---
    # TODO(synk): HF/KoBERT BERT uses exact (erf) GELU; tanh approximation used here.
    ffn = jnp.dot(_bf16(h1), w1_ref[...], preferred_element_type=jnp.float32) + b1_ref[...]
    ffn = jax.nn.gelu(ffn, approximate=True)
    ffn = jnp.dot(_bf16(ffn), w2_ref[...], preferred_element_type=jnp.float32) + b2_ref[...]
    h2 = _layernorm(ffn + h1, ln2g_ref[...], ln2b_ref[...], eps)

    if apply_pool:
        # --- fused pooler (tanh) + classifier epilogue on the CLS rows ---
        cls = h2.reshape(b_blk, seq, hidden)[:, 0, :]        # [b_blk, H]
        pooled = jnp.tanh(jnp.dot(_bf16(cls), wp_ref[...],
                                  preferred_element_type=jnp.float32) + bp_ref[...])
        logits = jnp.dot(_bf16(pooled), wc_ref[...],
                         preferred_element_type=jnp.float32) + bc_ref[...]
        o_ref[0] = logits                                     # lane-dense [b_blk, CLASS_PAD]
    else:
        o_ref[...] = h2.reshape(b_blk, seq, hidden)


def encoder_layer(h, ext_bias, lyr, *, b_blk, emb_ln=None, pool_cls=None):
    """h: [B, S, H] f32 (raw embedding sum if emb_ln given), ext_bias: [B, 1, S] f32."""
    B, S, H = h.shape
    assert B % b_blk == 0
    nb = B // b_blk
    apply_in_ln = emb_ln is not None
    apply_pool = pool_cls is not None

    inputs = [h, ext_bias]
    in_specs = [
        pl.BlockSpec((b_blk, S, H), lambda b: (b, 0, 0)),     # hidden-state row block
        pl.BlockSpec((b_blk, 1, S), lambda b: (b, 0, 0)),     # extended mask bias
    ]
    if apply_in_ln:
        inputs += [emb_ln[0], emb_ln[1]]
        in_specs += [pl.BlockSpec((1, H), lambda b: (0, 0)),
                     pl.BlockSpec((1, H), lambda b: (0, 0))]
    inputs += [lyr["wqkv"], lyr["bqkv"], lyr["wo"], lyr["bo"],
               lyr["ln1_g"], lyr["ln1_b"],
               lyr["w1"], lyr["b1"], lyr["w2"], lyr["b2"],
               lyr["ln2_g"], lyr["ln2_b"]]
    in_specs += [
        pl.BlockSpec((H, 3 * H), lambda b: (0, 0)),           # wqkv (fused, bf16)
        pl.BlockSpec((1, 3 * H), lambda b: (0, 0)),           # bqkv
        pl.BlockSpec((H, H), lambda b: (0, 0)),               # wo (bf16)
        pl.BlockSpec((1, H), lambda b: (0, 0)),               # bo
        pl.BlockSpec((1, H), lambda b: (0, 0)),               # ln1 gamma
        pl.BlockSpec((1, H), lambda b: (0, 0)),               # ln1 beta
        pl.BlockSpec((H, FFN), lambda b: (0, 0)),             # w1 (bf16)
        pl.BlockSpec((1, FFN), lambda b: (0, 0)),             # b1
        pl.BlockSpec((FFN, H), lambda b: (0, 0)),             # w2 (bf16)
        pl.BlockSpec((1, H), lambda b: (0, 0)),               # b2
        pl.BlockSpec((1, H), lambda b: (0, 0)),               # ln2 gamma
        pl.BlockSpec((1, H), lambda b: (0, 0)),               # ln2 beta
    ]
    if apply_pool:
        wp, bp, wc, bc = pool_cls
        CP = wc.shape[1]
        inputs += [wp, bp, wc, bc]
        in_specs += [pl.BlockSpec((H, H), lambda b: (0, 0)),
                     pl.BlockSpec((1, H), lambda b: (0, 0)),
                     pl.BlockSpec((H, CP), lambda b: (0, 0)),
                     pl.BlockSpec((1, CP), lambda b: (0, 0))]
        out_shape = jax.ShapeDtypeStruct((nb, b_blk, CP), jnp.float32)
        out_specs = pl.BlockSpec((1, b_blk, CP), lambda b: (b, 0, 0))
    else:
        out_shape = jax.ShapeDtypeStruct((B, S, H), jnp.float32)
        out_specs = pl.BlockSpec((b_blk, S, H), lambda b: (b, 0, 0))

    out = pl.pallas_call(
        functools.partial(_encoder_layer_kernel,
                          num_heads=N_HEADS, head_dim=HEAD_DIM, eps=LN_EPS,
                          apply_in_ln=apply_in_ln, apply_pool=apply_pool),
        out_shape=out_shape,
        grid=(nb,),
        in_specs=in_specs,
        out_specs=out_specs,
        compiler_params=pltpu.CompilerParams(dimension_semantics=("parallel",)),
    )(*inputs)

    if apply_pool:
        out = out.reshape(B, -1)                              # [B, CLASS_PAD]
    return out


# ---------------------------- parameters ----------------------------


def init_params(key):
    scale = 0.02

    def nrm(k, shape):
        return scale * jax.random.normal(k, shape, jnp.float32)

    keys = jax.random.split(key, 8 + N_LAYERS)
    cls_w = nrm(keys[4], (HIDDEN, NUM_CLASSES))
    cls_w_pad = jnp.zeros((HIDDEN, CLASS_PAD), jnp.float32).at[:, :NUM_CLASSES].set(cls_w)
    p = {
        "word_emb": nrm(keys[0], (VOCAB, HIDDEN)),
        "pos_emb": nrm(keys[1], (MAX_POS, HIDDEN)),
        "type_emb": nrm(keys[2], (TYPE_VOCAB, HIDDEN)),
        "emb_ln_g": jnp.ones((1, HIDDEN), jnp.float32),
        "emb_ln_b": jnp.zeros((1, HIDDEN), jnp.float32),
        "pool_w": nrm(keys[3], (HIDDEN, HIDDEN)).astype(jnp.bfloat16),
        "pool_b": jnp.zeros((1, HIDDEN), jnp.float32),
        "cls_w_pad": cls_w_pad.astype(jnp.bfloat16),          # self.classifier (lane-padded)
        "cls_b_pad": jnp.zeros((1, CLASS_PAD), jnp.float32),
        "layers": [],
    }
    for l in range(N_LAYERS):
        lk = jax.random.split(keys[8 + l], 6)
        wq, wk, wv = (nrm(lk[0], (HIDDEN, HIDDEN)),
                      nrm(lk[1], (HIDDEN, HIDDEN)),
                      nrm(lk[2], (HIDDEN, HIDDEN)))
        p["layers"].append({
            "wqkv": jnp.concatenate([wq, wk, wv], axis=1).astype(jnp.bfloat16),  # fused [H, 3H]
            "bqkv": jnp.zeros((1, 3 * HIDDEN), jnp.float32),
            "wo": nrm(lk[3], (HIDDEN, HIDDEN)).astype(jnp.bfloat16),
            "bo": jnp.zeros((1, HIDDEN), jnp.float32),
            "ln1_g": jnp.ones((1, HIDDEN), jnp.float32),
            "ln1_b": jnp.zeros((1, HIDDEN), jnp.float32),
            "w1": nrm(lk[4], (HIDDEN, FFN)).astype(jnp.bfloat16),
            "b1": jnp.zeros((1, FFN), jnp.float32),
            "w2": nrm(lk[5], (FFN, HIDDEN)).astype(jnp.bfloat16),
            "b2": jnp.zeros((1, HIDDEN), jnp.float32),
            "ln2_g": jnp.ones((1, HIDDEN), jnp.float32),
            "ln2_b": jnp.zeros((1, HIDDEN), jnp.float32),
        })
    return p


# ---------------------------- forward pass ----------------------------


def bert_classifier_forward(params, string_ids, attention_mask, segment_ids):
    """Equivalent of BertClassifier.forward: _, out = bert(...); out = classifier(out)."""
    B, S = string_ids.shape
    H = HIDDEN

    # --- BERT embeddings (table gathers = JAX glue; LayerNorm fused into layer 0) ---
    emb = (params["word_emb"][string_ids]
           + params["pos_emb"][None, :S, :]
           + params["type_emb"][segment_ids])                 # segment_ids ~ .long()

    # --- extended attention-mask bias, hoisted out of the layer loop ---
    ext_bias = ((1.0 - attention_mask.astype(jnp.float32)) * -10000.0).reshape(B, 1, S)

    # --- batch blocking: keep >= 2 "parallel" grid blocks when possible (v7x 2-TC),
    #     each block carries B//n_blocks sequences flattened to fill sublanes ---
    n_blocks = 2 if (B >= 2 and B % 2 == 0) else 1
    b_blk = B // n_blocks

    # --- BERT encoder: ONE fused Pallas kernel per layer ---
    #     layer 0 prologue = embedding LN; last layer epilogue = pooler + classifier.
    h = emb
    n_layers = len(params["layers"])
    for i, lyr in enumerate(params["layers"]):
        emb_ln = (params["emb_ln_g"], params["emb_ln_b"]) if i == 0 else None
        pool_cls = ((params["pool_w"], params["pool_b"],
                     params["cls_w_pad"], params["cls_b_pad"])
                    if i == n_layers - 1 else None)
        h = encoder_layer(h, ext_bias, lyr, b_blk=b_blk, emb_ln=emb_ln, pool_cls=pool_cls)

    # h is now lane-padded logits [B, CLASS_PAD].
    # dr_rate=None -> dropout branch is skipped (identity).
    # TODO(synk): training-mode dropout (dr_rate) not implemented; inference identity only.
    return h[:, :NUM_CLASSES]


# ---------------------------- driver ----------------------------

if __name__ == "__main__":
    key = jax.random.PRNGKey(0)
    pkey, ikey = jax.random.split(key)
    params = init_params(pkey)

    B, S = 2, 8
    string_ids = jax.random.randint(ikey, (B, S), 0, VOCAB, dtype=jnp.int32)
    attention_mask = jnp.array([[1, 1, 1, 1, 1, 1, 1, 1],
                                [1, 1, 1, 1, 1, 1, 0, 0]], dtype=jnp.int32)
    segment_ids = jnp.zeros((B, S), dtype=jnp.int32)

    fwd = jax.jit(bert_classifier_forward)
    logits = fwd(params, string_ids, attention_mask, segment_ids)
    logits = jax.block_until_ready(logits)
    assert logits.shape == (B, NUM_CLASSES)
    assert bool(jnp.all(jnp.isfinite(logits)))
    print("KERNEL_OK")
</pallas_src>

<mosaic_0001>
module attributes {stable_mosaic.version = 11 : i64} {
  func.func @_encoder_layer_kernel(%arg0: i32, %arg1: memref<1x8x32xf32, #tpu.memory_space<vmem>>, %arg2: memref<1x1x8xf32, #tpu.memory_space<vmem>>, %arg3: memref<32x96xbf16, #tpu.memory_space<vmem>>, %arg4: memref<1x96xf32, #tpu.memory_space<vmem>>, %arg5: memref<32x32xbf16, #tpu.memory_space<vmem>>, %arg6: memref<1x32xf32, #tpu.memory_space<vmem>>, %arg7: memref<1x32xf32, #tpu.memory_space<vmem>>, %arg8: memref<1x32xf32, #tpu.memory_space<vmem>>, %arg9: memref<32x128xbf16, #tpu.memory_space<vmem>>, %arg10: memref<1x128xf32, #tpu.memory_space<vmem>>, %arg11: memref<128x32xbf16, #tpu.memory_space<vmem>>, %arg12: memref<1x32xf32, #tpu.memory_space<vmem>>, %arg13: memref<1x32xf32, #tpu.memory_space<vmem>>, %arg14: memref<1x32xf32, #tpu.memory_space<vmem>>, %arg15: memref<32x32xbf16, #tpu.memory_space<vmem>>, %arg16: memref<1x32xf32, #tpu.memory_space<vmem>>, %arg17: memref<32x128xbf16, #tpu.memory_space<vmem>>, %arg18: memref<1x128xf32, #tpu.memory_space<vmem>>, %arg19: memref<1x1x128xf32, #tpu.memory_space<vmem>>) attributes {dimension_semantics = [#tpu.dimension_semantics<parallel>], iteration_bounds = array<i64: 2>, scalar_prefetch = 0 : i64, scratch_operands = 0 : i64, tpu.core_type = #tpu.core_type<tc>, window_params = [{transform_indices = @transform_0, window_bounds = array<i64: 1, 8, 32>}, {transform_indices = @transform_1, window_bounds = array<i64: 1, 1, 8>}, {pipeline_mode = #tpu.pipeline_mode<synchronous>, transform_indices = @transform_2, window_bounds = array<i64: 32, 96>}, {pipeline_mode = #tpu.pipeline_mode<synchronous>, transform_indices = @transform_3, window_bounds = array<i64: 1, 96>}, {pipeline_mode = #tpu.pipeline_mode<synchronous>, transform_indices = @transform_4, window_bounds = array<i64: 32, 32>}, {pipeline_mode = #tpu.pipeline_mode<synchronous>, transform_indices = @transform_5, window_bounds = array<i64: 1, 32>}, {pipeline_mode = #tpu.pipeline_mode<synchronous>, transform_indices = @transform_6, window_bounds = array<i64: 1, 32>}, {pipeline_mode = #tpu.pipeline_mode<synchronous>, transform_indices = @transform_7, window_bounds = array<i64: 1, 32>}, {pipeline_mode = #tpu.pipeline_mode<synchronous>, transform_indices = @transform_8, window_bounds = array<i64: 32, 128>}, {pipeline_mode = #tpu.pipeline_mode<synchronous>, transform_indices = @transform_9, window_bounds = array<i64: 1, 128>}, {pipeline_mode = #tpu.pipeline_mode<synchronous>, transform_indices = @transform_10, window_bounds = array<i64: 128, 32>}, {pipeline_mode = #tpu.pipeline_mode<synchronous>, transform_indices = @transform_11, window_bounds = array<i64: 1, 32>}, {pipeline_mode = #tpu.pipeline_mode<synchronous>, transform_indices = @transform_12, window_bounds = array<i64: 1, 32>}, {pipeline_mode = #tpu.pipeline_mode<synchronous>, transform_indices = @transform_13, window_bounds = array<i64: 1, 32>}, {pipeline_mode = #tpu.pipeline_mode<synchronous>, transform_indices = @transform_14, window_bounds = array<i64: 32, 32>}, {pipeline_mode = #tpu.pipeline_mode<synchronous>, transform_indices = @transform_15, window_bounds = array<i64: 1, 32>}, {pipeline_mode = #tpu.pipeline_mode<synchronous>, transform_indices = @transform_16, window_bounds = array<i64: 32, 128>}, {pipeline_mode = #tpu.pipeline_mode<synchronous>, transform_indices = @transform_17, window_bounds = array<i64: 1, 128>}, {transform_indices = @transform_18, window_bounds = array<i64: 1, 1, 128>}]} {
    %c0 = arith.constant 0 : index
    %c0_0 = arith.constant 0 : index
    %c0_1 = arith.constant 0 : index
    %0 = vector.load %arg1[%c0, %c0_0, %c0_1] : memref<1x8x32xf32, #tpu.memory_space<vmem>>, vector<1x8x32xf32>
    %1 = vector.shape_cast %0 : vector<1x8x32xf32> to vector<8x32xf32>
    %c0_2 = arith.constant 0 : index
    %c0_3 = arith.constant 0 : index
    %c0_4 = arith.constant 0 : index
    %2 = vector.load %arg2[%c0_2, %c0_3, %c0_4] : memref<1x1x8xf32, #tpu.memory_space<vmem>>, vector<1x1x8xf32>
    %3 = arith.truncf %1 : vector<8x32xf32> to vector<8x32xbf16>
    %c0_5 = arith.constant 0 : index
    %c0_6 = arith.constant 0 : index
    %4 = vector.load %arg3[%c0_5, %c0_6] : memref<32x96xbf16, #tpu.memory_space<vmem>>, vector<32x96xbf16>
    %cst = arith.constant dense<0.000000e+00> : vector<8x96xf32>
    %5 = tpu.matmul %3, %4, %cst {dimension_numbers = #tpu.dot_dimension_numbers<[1], [0], [0], [1], [0, 0, 1, 1], [], []>} : vector<8x32xbf16>, vector<32x96xbf16>, vector<8x96xf32> -> vector<8x96xf32>
    %c0_7 = arith.constant 0 : index
    %c0_8 = arith.constant 0 : index
    %6 = vector.load %arg4[%c0_7, %c0_8] : memref<1x96xf32, #tpu.memory_space<vmem>>, vector<1x96xf32>
    %7 = vector.broadcast %6 : vector<1x96xf32> to vector<8x96xf32>
    %8 = arith.addf %5, %7 : vector<8x96xf32>
    %9 = vector.extract_strided_slice %8 {offsets = [0, 0], sizes = [8, 16], strides = [1, 1]} : vector<8x96xf32> to vector<8x16xf32>
    %10 = vector.shape_cast %9 : vector<8x16xf32> to vector<1x8x16xf32>
    %11 = vector.extract_strided_slice %8 {offsets = [0, 32], sizes = [8, 16], strides = [1, 1]} : vector<8x96xf32> to vector<8x16xf32>
    %12 = vector.shape_cast %11 : vector<8x16xf32> to vector<1x8x16xf32>
    %13 = vector.extract_strided_slice %8 {offsets = [0, 64], sizes = [8, 16], strides = [1, 1]} : vector<8x96xf32> to vector<8x16xf32>
    %14 = vector.shape_cast %13 : vector<8x16xf32> to vector<1x8x16xf32>
    %15 = arith.truncf %10 : vector<1x8x16xf32> to vector<1x8x16xbf16>
    %16 = arith.truncf %12 : vector<1x8x16xf32> to vector<1x8x16xbf16>
    "tpu.trace_start"() <{level = 10 : i32, message = "bqd,bkd->bqk"}> : () -> ()
    %cst_9 = arith.constant dense<0.000000e+00> : vector<1x8x8xf32>
    %17 = tpu.matmul %15, %16, %cst_9 {dimension_numbers = #tpu.dot_dimension_numbers<[2], [2], [1], [1], [0, 0, 0, 1, 1, 1], [0], [0]>} : vector<1x8x16xbf16>, vector<1x8x16xbf16>, vector<1x8x8xf32> -> vector<1x8x8xf32>
    "tpu.trace_stop"() : () -> ()
    %cst_10 = arith.constant 2.500000e-01 : f32
    %18 = vector.broadcast %cst_10 : f32 to vector<1x8x8xf32>
    %19 = arith.mulf %17, %18 : vector<1x8x8xf32>
    %20 = vector.broadcast %2 : vector<1x1x8xf32> to vector<1x8x8xf32>
    %21 = arith.addf %19, %20 : vector<1x8x8xf32>
    %cst_11 = arith.constant dense<0xFF800000> : vector<1x8xf32>
    %22 = vector.multi_reduction <maximumf>, %21, %cst_11 [2] : vector<1x8x8xf32> to vector<1x8xf32>
    %23 = vector.shape_cast %22 : vector<1x8xf32> to vector<1x8x1xf32>
    %24 = vector.broadcast %23 : vector<1x8x1xf32> to vector<1x8x8xf32>
    %25 = arith.subf %21, %24 : vector<1x8x8xf32>
    %26 = math.exp %25 : vector<1x8x8xf32>
    %cst_12 = arith.constant dense<0.000000e+00> : vector<1x8xf32>
    %27 = vector.multi_reduction <add>, %26, %cst_12 [2] : vector<1x8x8xf32> to vector<1x8xf32>
    %28 = vector.shape_cast %27 : vector<1x8xf32> to vector<1x8x1xf32>
    %29 = tpu.reciprocal %28 {approx = true} : vector<1x8x1xf32> -> vector<1x8x1xf32>
    %30 = vector.broadcast %29 : vector<1x8x1xf32> to vector<1x8x8xf32>
    %31 = arith.mulf %26, %30 : vector<1x8x8xf32>
    %32 = arith.truncf %31 : vector<1x8x8xf32> to vector<1x8x8xbf16>
    %33 = arith.truncf %14 : vector<1x8x16xf32> to vector<1x8x16xbf16>
    "tpu.trace_start"() <{level = 10 : i32, message = "bqk,bkd->bqd"}> : () -> ()
    %cst_13 = arith.constant dense<0.000000e+00> : vector<1x8x16xf32>
    %34 = tpu.matmul %32, %33, %cst_13 {dimension_numbers = #tpu.dot_dimension_numbers<[2], [1], [1], [2], [0, 0, 0, 1, 1, 2], [0], [0]>} : vector<1x8x8xbf16>, vector<1x8x16xbf16>, vector<1x8x16xf32> -> vector<1x8x16xf32>
    "tpu.trace_stop"() : () -> ()
    %35 = vector.shape_cast %34 : vector<1x8x16xf32> to vector<8x16xf32>
    %36 = vector.extract_strided_slice %8 {offsets = [0, 16], sizes = [8, 16], strides = [1, 1]} : vector<8x96xf32> to vector<8x16xf32>
    %37 = vector.shape_cast %36 : vector<8x16xf32> to vector<1x8x16xf32>
    %38 = vector.extract_strided_slice %8 {offsets = [0, 48], sizes = [8, 16], strides = [1, 1]} : vector<8x96xf32> to vector<8x16xf32>
    %39 = vector.shape_cast %38 : vector<8x16xf32> to vector<1x8x16xf32>
    %40 = vector.extract_strided_slice %8 {offsets = [0, 80], sizes = [8, 16], strides = [1, 1]} : vector<8x96xf32> to vector<8x16xf32>
    %41 = vector.shape_cast %40 : vector<8x16xf32> to vector<1x8x16xf32>
    %42 = arith.truncf %37 : vector<1x8x16xf32> to vector<1x8x16xbf16>
    %43 = arith.truncf %39 : vector<1x8x16xf32> to vector<1x8x16xbf16>
    "tpu.trace_start"() <{level = 10 : i32, message = "bqd,bkd->bqk"}> : () -> ()
    %cst_14 = arith.constant dense<0.000000e+00> : vector<1x8x8xf32>
    %44 = tpu.matmul %42, %43, %cst_14 {dimension_numbers = #tpu.dot_dimension_numbers<[2], [2], [1], [1], [0, 0, 0, 1, 1, 1], [0], [0]>} : vector<1x8x16xbf16>, vector<1x8x16xbf16>, vector<1x8x8xf32> -> vector<1x8x8xf32>
    "tpu.trace_stop"() : () -> ()
    %cst_15 = arith.constant 2.500000e-01 : f32
    %45 = vector.broadcast %cst_15 : f32 to vector<1x8x8xf32>
    %46 = arith.mulf %44, %45 : vector<1x8x8xf32>
    %47 = vector.broadcast %2 : vector<1x1x8xf32> to vector<1x8x8xf32>
    %48 = arith.addf %46, %47 : vector<1x8x8xf32>
    %cst_16 = arith.constant dense<0xFF800000> : vector<1x8xf32>
    %49 = vector.multi_reduction <maximumf>, %48, %cst_16 [2] : vector<1x8x8xf32> to vector<1x8xf32>
    %50 = vector.shape_cast %49 : vector<1x8xf32> to vector<1x8x1xf32>
    %51 = vector.broadcast %50 : vector<1x8x1xf32> to vector<1x8x8xf32>
    %52 = arith.subf %48, %51 : vector<1x8x8xf32>
    %53 = math.exp %52 : vector<1x8x8xf32>
    %cst_17 = arith.constant dense<0.000000e+00> : vector<1x8xf32>
    %54 = vector.multi_reduction <add>, %53, %cst_17 [2] : vector<1x8x8xf32> to vector<1x8xf32>
    %55 = vector.shape_cast %54 : vector<1x8xf32> to vector<1x8x1xf32>
    %56 = tpu.reciprocal %55 {approx = true} : vector<1x8x1xf32> -> vector<1x8x1xf32>
    %57 = vector.broadcast %56 : vector<1x8x1xf32> to vector<1x8x8xf32>
    %58 = arith.mulf %53, %57 : vector<1x8x8xf32>
    %59 = arith.truncf %58 : vector<1x8x8xf32> to vector<1x8x8xbf16>
    %60 = arith.truncf %41 : vector<1x8x16xf32> to vector<1x8x16xbf16>
    "tpu.trace_start"() <{level = 10 : i32, message = "bqk,bkd->bqd"}> : () -> ()
    %cst_18 = arith.constant dense<0.000000e+00> : vector<1x8x16xf32>
    %61 = tpu.matmul %59, %60, %cst_18 {dimension_numbers = #tpu.dot_dimension_numbers<[2], [1], [1], [2], [0, 0, 0, 1, 1, 2], [0], [0]>} : vector<1x8x8xbf16>, vector<1x8x16xbf16>, vector<1x8x16xf32> -> vector<1x8x16xf32>
    "tpu.trace_stop"() : () -> ()
    %62 = vector.shape_cast %61 : vector<1x8x16xf32> to vector<8x16xf32>
    %63 = tpu.concatenate %35, %62 in 1 : vector<8x16xf32>, vector<8x16xf32> -> vector<8x32xf32>
    %64 = arith.truncf %63 : vector<8x32xf32> to vector<8x32xbf16>
    %c0_19 = arith.constant 0 : index
    %c0_20 = arith.constant 0 : index
    %65 = vector.load %arg5[%c0_19, %c0_20] : memref<32x32xbf16, #tpu.memory_space<vmem>>, vector<32x32xbf16>
    %cst_21 = arith.constant dense<0.000000e+00> : vector<8x32xf32>
    %66 = tpu.matmul %64, %65, %cst_21 {dimension_numbers = #tpu.dot_dimension_numbers<[1], [0], [0], [1], [0, 0, 1, 1], [], []>} : vector<8x32xbf16>, vector<32x32xbf16>, vector<8x32xf32> -> vector<8x32xf32>
    %c0_22 = arith.constant 0 : index
    %c0_23 = arith.constant 0 : index
    %67 = vector.load %arg6[%c0_22, %c0_23] : memref<1x32xf32, #tpu.memory_space<vmem>>, vector<1x32xf32>
    %68 = vector.broadcast %67 : vector<1x32xf32> to vector<8x32xf32>
    %69 = arith.addf %66, %68 : vector<8x32xf32>
    %70 = arith.addf %69, %1 : vector<8x32xf32>
    %c0_24 = arith.constant 0 : index
    %c0_25 = arith.constant 0 : index
    %71 = vector.load %arg7[%c0_24, %c0_25] : memref<1x32xf32, #tpu.memory_space<vmem>>, vector<1x32xf32>
    %c0_26 = arith.constant 0 : index
    %c0_27 = arith.constant 0 : index
    %72 = vector.load %arg8[%c0_26, %c0_27] : memref<1x32xf32, #tpu.memory_space<vmem>>, vector<1x32xf32>
    %cst_28 = arith.constant dense<0.000000e+00> : vector<8xf32>
    %73 = vector.multi_reduction <add>, %70, %cst_28 [1] : vector<8x32xf32> to vector<8xf32>
    %74 = vector.shape_cast %73 : vector<8xf32> to vector<8x1xf32>
    %cst_29 = arith.constant 3.200000e+01 : f32
    %75 = vector.broadcast %cst_29 : f32 to vector<8x1xf32>
    %76 = arith.divf %74, %75 : vector<8x1xf32>
    %77 = vector.broadcast %76 : vector<8x1xf32> to vector<8x32xf32>
    %78 = arith.subf %70, %77 : vector<8x32xf32>
    %79 = arith.mulf %78, %78 : vector<8x32xf32>
    %cst_30 = arith.constant dense<0.000000e+00> : vector<8xf32>
    %80 = vector.multi_reduction <add>, %79, %cst_30 [1] : vector<8x32xf32> to vector<8xf32>
    %81 = vector.shape_cast %80 : vector<8xf32> to vector<8x1xf32>
    %cst_31 = arith.constant 3.200000e+01 : f32
    %82 = vector.broadcast %cst_31 : f32 to vector<8x1xf32>
    %83 = arith.divf %81, %82 : vector<8x1xf32>
    %84 = vector.broadcast %76 : vector<8x1xf32> to vector<8x32xf32>
    %85 = arith.subf %70, %84 : vector<8x32xf32>
    %cst_32 = arith.constant 9.99999996E-13 : f32
    %86 = vector.broadcast %cst_32 : f32 to vector<8x1xf32>
    %87 = arith.addf %83, %86 : vector<8x1xf32>
    %88 = math.rsqrt %87 : vector<8x1xf32>
    %89 = vector.broadcast %88 : vector<8x1xf32> to vector<8x32xf32>
    %90 = arith.mulf %85, %89 : vector<8x32xf32>
    %91 = vector.broadcast %71 : vector<1x32xf32> to vector<8x32xf32>
    %92 = arith.mulf %90, %91 : vector<8x32xf32>
    %93 = vector.broadcast %72 : vector<1x32xf32> to vector<8x32xf32>
    %94 = arith.addf %92, %93 : vector<8x32xf32>
    %95 = arith.truncf %94 : vector<8x32xf32> to vector<8x32xbf16>
    %c0_33 = arith.constant 0 : index
    %c0_34 = arith.constant 0 : index
    %96 = vector.load %arg9[%c0_33, %c0_34] : memref<32x128xbf16, #tpu.memory_space<vmem>>, vector<32x128xbf16>
    %cst_35 = arith.constant dense<0.000000e+00> : vector<8x128xf32>
    %97 = tpu.matmul %95, %96, %cst_35 {dimension_numbers = #tpu.dot_dimension_numbers<[1], [0], [0], [1], [0, 0, 1, 1], [], []>} : vector<8x32xbf16>, vector<32x128xbf16>, vector<8x128xf32> -> vector<8x128xf32>
    %c0_36 = arith.constant 0 : index
    %c0_37 = arith.constant 0 : index
    %98 = vector.load %arg10[%c0_36, %c0_37] : memref<1x128xf32, #tpu.memory_space<vmem>>, vector<1x128xf32>
    %99 = vector.broadcast %98 : vector<1x128xf32> to vector<8x128xf32>
    %100 = arith.addf %97, %99 : vector<8x128xf32>
    %101 = arith.mulf %100, %100 : vector<8x128xf32>
    %102 = arith.mulf %100, %101 : vector<8x128xf32>
    %cst_38 = arith.constant 4.471500e-02 : f32
    %103 = vector.broadcast %cst_38 : f32 to vector<8x128xf32>
    %104 = arith.mulf %103, %102 : vector<8x128xf32>
    %105 = arith.addf %100, %104 : vector<8x128xf32>
    %cst_39 = arith.constant 0.797884583 : f32
    %106 = vector.broadcast %cst_39 : f32 to vector<8x128xf32>
    %107 = arith.mulf %106, %105 : vector<8x128xf32>
    %108 = math.tanh %107 : vector<8x128xf32>
    %cst_40 = arith.constant 1.000000e+00 : f32
    %109 = vector.broadcast %cst_40 : f32 to vector<8x128xf32>
    %110 = arith.addf %109, %108 : vector<8x128xf32>
    %cst_41 = arith.constant 5.000000e-01 : f32
    %111 = vector.broadcast %cst_41 : f32 to vector<8x128xf32>
    %112 = arith.mulf %111, %110 : vector<8x128xf32>
    %113 = arith.mulf %100, %112 : vector<8x128xf32>
    %114 = arith.truncf %113 : vector<8x128xf32> to vector<8x128xbf16>
    %c0_42 = arith.constant 0 : index
    %c0_43 = arith.constant 0 : index
    %115 = vector.load %arg11[%c0_42, %c0_43] : memref<128x32xbf16, #tpu.memory_space<vmem>>, vector<128x32xbf16>
    %cst_44 = arith.constant dense<0.000000e+00> : vector<8x32xf32>
    %116 = tpu.matmul %114, %115, %cst_44 {dimension_numbers = #tpu.dot_dimension_numbers<[1], [0], [0], [1], [0, 0, 1, 1], [], []>} : vector<8x128xbf16>, vector<128x32xbf16>, vector<8x32xf32> -> vector<8x32xf32>
    %c0_45 = arith.constant 0 : index
    %c0_46 = arith.constant 0 : index
    %117 = vector.load %arg12[%c0_45, %c0_46] : memref<1x32xf32, #tpu.memory_space<vmem>>, vector<1x32xf32>
    %118 = vector.broadcast %117 : vector<1x32xf32> to vector<8x32xf32>
    %119 = arith.addf %116, %118 : vector<8x32xf32>
    %120 = arith.addf %119, %94 : vector<8x32xf32>
    %c0_47 = arith.constant 0 : index
    %c0_48 = arith.constant 0 : index
    %121 = vector.load %arg13[%c0_47, %c0_48] : memref<1x32xf32, #tpu.memory_space<vmem>>, vector<1x32xf32>
    %c0_49 = arith.constant 0 : index
    %c0_50 = arith.constant 0 : index
    %122 = vector.load %arg14[%c0_49, %c0_50] : memref<1x32xf32, #tpu.memory_space<vmem>>, vector<1x32xf32>
    %cst_51 = arith.constant dense<0.000000e+00> : vector<8xf32>
    %123 = vector.multi_reduction <add>, %120, %cst_51 [1] : vector<8x32xf32> to vector<8xf32>
    %124 = vector.shape_cast %123 : vector<8xf32> to vector<8x1xf32>
    %cst_52 = arith.constant 3.200000e+01 : f32
    %125 = vector.broadcast %cst_52 : f32 to vector<8x1xf32>
    %126 = arith.divf %124, %125 : vector<8x1xf32>
    %127 = vector.broadcast %126 : vector<8x1xf32> to vector<8x32xf32>
    %128 = arith.subf %120, %127 : vector<8x32xf32>
    %129 = arith.mulf %128, %128 : vector<8x32xf32>
    %cst_53 = arith.constant dense<0.000000e+00> : vector<8xf32>
    %130 = vector.multi_reduction <add>, %129, %cst_53 [1] : vector<8x32xf32> to vector<8xf32>
    %131 = vector.shape_cast %130 : vector<8xf32> to vector<8x1xf32>
    %cst_54 = arith.constant 3.200000e+01 : f32
    %132 = vector.broadcast %cst_54 : f32 to vector<8x1xf32>
    %133 = arith.divf %131, %132 : vector<8x1xf32>
    %134 = vector.broadcast %126 : vector<8x1xf32> to vector<8x32xf32>
    %135 = arith.subf %120, %134 : vector<8x32xf32>
    %cst_55 = arith.constant 9.99999996E-13 : f32
    %136 = vector.broadcast %cst_55 : f32 to vector<8x1xf32>
    %137 = arith.addf %133, %136 : vector<8x1xf32>
    %138 = math.rsqrt %137 : vector<8x1xf32>
    %139 = vector.broadcast %138 : vector<8x1xf32> to vector<8x32xf32>
    %140 = arith.mulf %135, %139 : vector<8x32xf32>
    %141 = vector.broadcast %121 : vector<1x32xf32> to vector<8x32xf32>
    %142 = arith.mulf %140, %141 : vector<8x32xf32>
    %143 = vector.broadcast %122 : vector<1x32xf32> to vector<8x32xf32>
    %144 = arith.addf %142, %143 : vector<8x32xf32>
    %145 = vector.shape_cast %144 : vector<8x32xf32> to vector<1x8x32xf32>
    %146 = vector.extract_strided_slice %145 {offsets = [0, 0, 0], sizes = [1, 1, 32], strides = [1, 1, 1]} : vector<1x8x32xf32> to vector<1x1x32xf32>
    %147 = vector.shape_cast %146 : vector<1x1x32xf32> to vector<1x32xf32>
    %148 = arith.truncf %147 : vector<1x32xf32> to vector<1x32xbf16>
    %c0_56 = arith.constant 0 : index
    %c0_57 = arith.constant 0 : index
    %149 = vector.load %arg15[%c0_56, %c0_57] : memref<32x32xbf16, #tpu.memory_space<vmem>>, vector<32x32xbf16>
    %cst_58 = arith.constant dense<0.000000e+00> : vector<1x32xf32>
    %150 = tpu.matmul %148, %149, %cst_58 {dimension_numbers = #tpu.dot_dimension_numbers<[1], [0], [0], [1], [0, 0, 1, 1], [], []>} : vector<1x32xbf16>, vector<32x32xbf16>, vector<1x32xf32> -> vector<1x32xf32>
    %c0_59 = arith.constant 0 : index
    %c0_60 = arith.constant 0 : index
    %151 = vector.load %arg16[%c0_59, %c0_60] : memref<1x32xf32, #tpu.memory_space<vmem>>, vector<1x32xf32>
    %152 = arith.addf %150, %151 : vector<1x32xf32>
    %153 = math.tanh %152 : vector<1x32xf32>
    %154 = arith.truncf %153 : vector<1x32xf32> to vector<1x32xbf16>
    %c0_61 = arith.constant 0 : index
    %c0_62 = arith.constant 0 : index
    %155 = vector.load %arg17[%c0_61, %c0_62] : memref<32x128xbf16, #tpu.memory_space<vmem>>, vector<32x128xbf16>
    %cst_63 = arith.constant dense<0.000000e+00> : vector<1x128xf32>
    %156 = tpu.matmul %154, %155, %cst_63 {dimension_numbers = #tpu.dot_dimension_numbers<[1], [0], [0], [1], [0, 0, 1, 1], [], []>} : vector<1x32xbf16>, vector<32x128xbf16>, vector<1x128xf32> -> vector<1x128xf32>
    %c0_64 = arith.constant 0 : index
    %c0_65 = arith.constant 0 : index
    %157 = vector.load %arg18[%c0_64, %c0_65] : memref<1x128xf32, #tpu.memory_space<vmem>>, vector<1x128xf32>
    %158 = arith.addf %156, %157 : vector<1x128xf32>
    %c0_66 = arith.constant 0 : index
    %c0_67 = arith.constant 0 : index
    %c0_68 = arith.constant 0 : index
    %159 = vector.load %arg19[%c0_66, %c0_67, %c0_68] : memref<1x1x128xf32, #tpu.memory_space<vmem>>, vector<1x1x128xf32>
    %160 = vector.shape_cast %159 : vector<1x1x128xf32> to vector<1x128xf32>
    %161 = vector.shape_cast %158 : vector<1x128xf32> to vector<1x1x128xf32>
    tpu.vector_store %arg19[%c0_66, %c0_67, %c0_68], %161 {strides = array<i32>} : memref<1x1x128xf32, #tpu.memory_space<vmem>>, vector<1x1x128xf32>,
    return
  }
  func.func @transform_0(%arg0: i32) -> (i32, i32, i32) {
    %c0_i32 = arith.constant 0 : i32
    %c0_i32_0 = arith.constant 0 : i32
    %c0_i32_1 = arith.constant 0 : i32
    return %arg0, %c0_i32, %c0_i32_0 : i32, i32, i32
  }
  func.func @transform_1(%arg0: i32) -> (i32, i32, i32) {
    %c0_i32 = arith.constant 0 : i32
    %c0_i32_0 = arith.constant 0 : i32
    %c0_i32_1 = arith.constant 0 : i32
    return %arg0, %c0_i32, %c0_i32_0 : i32, i32, i32
  }
  func.func @transform_2(%arg0: i32) -> (i32, i32) {
    %c0_i32 = arith.constant 0 : i32
    %c0_i32_0 = arith.constant 0 : i32
    %c0_i32_1 = arith.constant 0 : i32
    return %c0_i32, %c0_i32_0 : i32, i32
  }
  func.func @transform_3(%arg0: i32) -> (i32, i32) {
    %c0_i32 = arith.constant 0 : i32
    %c0_i32_0 = arith.constant 0 : i32
    %c0_i32_1 = arith.constant 0 : i32
    return %c0_i32, %c0_i32_0 : i32, i32
  }
  func.func @transform_4(%arg0: i32) -> (i32, i32) {
    %c0_i32 = arith.constant 0 : i32
    %c0_i32_0 = arith.constant 0 : i32
    %c0_i32_1 = arith.constant 0 : i32
    return %c0_i32, %c0_i32_0 : i32, i32
  }
  func.func @transform_5(%arg0: i32) -> (i32, i32) {
    %c0_i32 = arith.constant 0 : i32
    %c0_i32_0 = arith.constant 0 : i32
    %c0_i32_1 = arith.constant 0 : i32
    return %c0_i32, %c0_i32_0 : i32, i32
  }
  func.func @transform_6(%arg0: i32) -> (i32, i32) {
    %c0_i32 = arith.constant 0 : i32
    %c0_i32_0 = arith.constant 0 : i32
    %c0_i32_1 = arith.constant 0 : i32
    return %c0_i32, %c0_i32_0 : i32, i32
  }
  func.func @transform_7(%arg0: i32) -> (i32, i32) {
    %c0_i32 = arith.constant 0 : i32
    %c0_i32_0 = arith.constant 0 : i32
    %c0_i32_1 = arith.constant 0 : i32
    return %c0_i32, %c0_i32_0 : i32, i32
  }
  func.func @transform_8(%arg0: i32) -> (i32, i32) {
    %c0_i32 = arith.constant 0 : i32
    %c0_i32_0 = arith.constant 0 : i32
    %c0_i32_1 = arith.constant 0 : i32
    return %c0_i32, %c0_i32_0 : i32, i32
  }
  func.func @transform_9(%arg0: i32) -> (i32, i32) {
    %c0_i32 = arith.constant 0 : i32
    %c0_i32_0 = arith.constant 0 : i32
    %c0_i32_1 = arith.constant 0 : i32
    return %c0_i32, %c0_i32_0 : i32, i32
  }
  func.func @transform_10(%arg0: i32) -> (i32, i32) {
    %c0_i32 = arith.constant 0 : i32
    %c0_i32_0 = arith.constant 0 : i32
    %c0_i32_1 = arith.constant 0 : i32
    return %c0_i32, %c0_i32_0 : i32, i32
  }
  func.func @transform_11(%arg0: i32) -> (i32, i32) {
    %c0_i32 = arith.constant 0 : i32
    %c0_i32_0 = arith.constant 0 : i32
    %c0_i32_1 = arith.constant 0 : i32
    return %c0_i32, %c0_i32_0 : i32, i32
  }
  func.func @transform_12(%arg0: i32) -> (i32, i32) {
    %c0_i32 = arith.constant 0 : i32
    %c0_i32_0 = arith.constant 0 : i32
    %c0_i32_1 = arith.constant 0 : i32
    return %c0_i32, %c0_i32_0 : i32, i32
  }
  func.func @transform_13(%arg0: i32) -> (i32, i32) {
    %c0_i32 = arith.constant 0 : i32
    %c0_i32_0 = arith.constant 0 : i32
    %c0_i32_1 = arith.constant 0 : i32
    return %c0_i32, %c0_i32_0 : i32, i32
  }
  func.func @transform_14(%arg0: i32) -> (i32, i32) {
    %c0_i32 = arith.constant 0 : i32
    %c0_i32_0 = arith.constant 0 : i32
    %c0_i32_1 = arith.constant 0 : i32
    return %c0_i32, %c0_i32_0 : i32, i32
  }
  func.func @transform_15(%arg0: i32) -> (i32, i32) {
    %c0_i32 = arith.constant 0 : i32
    %c0_i32_0 = arith.constant 0 : i32
    %c0_i32_1 = arith.constant 0 : i32
    return %c0_i32, %c0_i32_0 : i32, i32
  }
  func.func @transform_16(%arg0: i32) -> (i32, i32) {
    %c0_i32 = arith.constant 0 : i32
    %c0_i32_0 = arith.constant 0 : i32
    %c0_i32_1 = arith.constant 0 : i32
    return %c0_i32, %c0_i32_0 : i32, i32
  }
  func.func @transform_17(%arg0: i32) -> (i32, i32) {
    %c0_i32 = arith.constant 0 : i32
    %c0_i32_0 = arith.constant 0 : i32
    %c0_i32_1 = arith.constant 0 : i32
    return %c0_i32, %c0_i32_0 : i32, i32
  }
  func.func @transform_18(%arg0: i32) -> (i32, i32, i32) {
    %c0_i32 = arith.constant 0 : i32
    %c0_i32_0 = arith.constant 0 : i32
    %c0_i32_1 = arith.constant 0 : i32
    return %arg0, %c0_i32, %c0_i32_0 : i32, i32, i32
  }
}

module attributes {stable_mosaic.version = 11 : i64} {
  func.func @_encoder_layer_kernel(%arg0: i32, %arg1: memref<1x8x32xf32, #tpu.memory_space<vmem>>, %arg2: memref<1x1x8xf32, #tpu.memory_space<vmem>>, %arg3: memref<1x32xf32, #tpu.memory_space<vmem>>, %arg4: memref<1x32xf32, #tpu.memory_space<vmem>>, %arg5: memref<32x96xbf16, #tpu.memory_space<vmem>>, %arg6: memref<1x96xf32, #tpu.memory_space<vmem>>, %arg7: memref<32x32xbf16, #tpu.memory_space<vmem>>, %arg8: memref<1x32xf32, #tpu.memory_space<vmem>>, %arg9: memref<1x32xf32, #tpu.memory_space<vmem>>, %arg10: memref<1x32xf32, #tpu.memory_space<vmem>>, %arg11: memref<32x128xbf16, #tpu.memory_space<vmem>>, %arg12: memref<1x128xf32, #tpu.memory_space<vmem>>, %arg13: memref<128x32xbf16, #tpu.memory_space<vmem>>, %arg14: memref<1x32xf32, #tpu.memory_space<vmem>>, %arg15: memref<1x32xf32, #tpu.memory_space<vmem>>, %arg16: memref<1x32xf32, #tpu.memory_space<vmem>>, %arg17: memref<1x8x32xf32, #tpu.memory_space<vmem>>) attributes {dimension_semantics = [#tpu.dimension_semantics<parallel>], iteration_bounds = array<i64: 2>, scalar_prefetch = 0 : i64, scratch_operands = 0 : i64, tpu.core_type = #tpu.core_type<tc>, window_params = [{transform_indices = @transform_0, window_bounds = array<i64: 1, 8, 32>}, {transform_indices = @transform_1, window_bounds = array<i64: 1, 1, 8>}, {pipeline_mode = #tpu.pipeline_mode<synchronous>, transform_indices = @transform_2, window_bounds = array<i64: 1, 32>}, {pipeline_mode = #tpu.pipeline_mode<synchronous>, transform_indices = @transform_3, window_bounds = array<i64: 1, 32>}, {pipeline_mode = #tpu.pipeline_mode<synchronous>, transform_indices = @transform_4, window_bounds = array<i64: 32, 96>}, {pipeline_mode = #tpu.pipeline_mode<synchronous>, transform_indices = @transform_5, window_bounds = array<i64: 1, 96>}, {pipeline_mode = #tpu.pipeline_mode<synchronous>, transform_indices = @transform_6, window_bounds = array<i64: 32, 32>}, {pipeline_mode = #tpu.pipeline_mode<synchronous>, transform_indices = @transform_7, window_bounds = array<i64: 1, 32>}, {pipeline_mode = #tpu.pipeline_mode<synchronous>, transform_indices = @transform_8, window_bounds = array<i64: 1, 32>}, {pipeline_mode = #tpu.pipeline_mode<synchronous>, transform_indices = @transform_9, window_bounds = array<i64: 1, 32>}, {pipeline_mode = #tpu.pipeline_mode<synchronous>, transform_indices = @transform_10, window_bounds = array<i64: 32, 128>}, {pipeline_mode = #tpu.pipeline_mode<synchronous>, transform_indices = @transform_11, window_bounds = array<i64: 1, 128>}, {pipeline_mode = #tpu.pipeline_mode<synchronous>, transform_indices = @transform_12, window_bounds = array<i64: 128, 32>}, {pipeline_mode = #tpu.pipeline_mode<synchronous>, transform_indices = @transform_13, window_bounds = array<i64: 1, 32>}, {pipeline_mode = #tpu.pipeline_mode<synchronous>, transform_indices = @transform_14, window_bounds = array<i64: 1, 32>}, {pipeline_mode = #tpu.pipeline_mode<synchronous>, transform_indices = @transform_15, window_bounds = array<i64: 1, 32>}, {transform_indices = @transform_16, window_bounds = array<i64: 1, 8, 32>}]} {
    %c0 = arith.constant 0 : index
    %c0_0 = arith.constant 0 : index
    %c0_1 = arith.constant 0 : index
    %0 = vector.load %arg1[%c0, %c0_0, %c0_1] : memref<1x8x32xf32, #tpu.memory_space<vmem>>, vector<1x8x32xf32>
    %1 = vector.shape_cast %0 : vector<1x8x32xf32> to vector<8x32xf32>
    %c0_2 = arith.constant 0 : index
    %c0_3 = arith.constant 0 : index
    %2 = vector.load %arg3[%c0_2, %c0_3] : memref<1x32xf32, #tpu.memory_space<vmem>>, vector<1x32xf32>
    %c0_4 = arith.constant 0 : index
    %c0_5 = arith.constant 0 : index
    %3 = vector.load %arg4[%c0_4, %c0_5] : memref<1x32xf32, #tpu.memory_space<vmem>>, vector<1x32xf32>
    %cst = arith.constant dense<0.000000e+00> : vector<8xf32>
    %4 = vector.multi_reduction <add>, %1, %cst [1] : vector<8x32xf32> to vector<8xf32>
    %5 = vector.shape_cast %4 : vector<8xf32> to vector<8x1xf32>
    %cst_6 = arith.constant 3.200000e+01 : f32
    %6 = vector.broadcast %cst_6 : f32 to vector<8x1xf32>
    %7 = arith.divf %5, %6 : vector<8x1xf32>
    %8 = vector.broadcast %7 : vector<8x1xf32> to vector<8x32xf32>
    %9 = arith.subf %1, %8 : vector<8x32xf32>
    %10 = arith.mulf %9, %9 : vector<8x32xf32>
    %cst_7 = arith.constant dense<0.000000e+00> : vector<8xf32>
    %11 = vector.multi_reduction <add>, %10, %cst_7 [1] : vector<8x32xf32> to vector<8xf32>
    %12 = vector.shape_cast %11 : vector<8xf32> to vector<8x1xf32>
    %cst_8 = arith.constant 3.200000e+01 : f32
    %13 = vector.broadcast %cst_8 : f32 to vector<8x1xf32>
    %14 = arith.divf %12, %13 : vector<8x1xf32>
    %15 = vector.broadcast %7 : vector<8x1xf32> to vector<8x32xf32>
    %16 = arith.subf %1, %15 : vector<8x32xf32>
    %cst_9 = arith.constant 9.99999996E-13 : f32
    %17 = vector.broadcast %cst_9 : f32 to vector<8x1xf32>
    %18 = arith.addf %14, %17 : vector<8x1xf32>
    %19 = math.rsqrt %18 : vector<8x1xf32>
    %20 = vector.broadcast %19 : vector<8x1xf32> to vector<8x32xf32>
    %21 = arith.mulf %16, %20 : vector<8x32xf32>
    %22 = vector.broadcast %2 : vector<1x32xf32> to vector<8x32xf32>
    %23 = arith.mulf %21, %22 : vector<8x32xf32>
    %24 = vector.broadcast %3 : vector<1x32xf32> to vector<8x32xf32>
    %25 = arith.addf %23, %24 : vector<8x32xf32>
    %c0_10 = arith.constant 0 : index
    %c0_11 = arith.constant 0 : index
    %c0_12 = arith.constant 0 : index
    %26 = vector.load %arg2[%c0_10, %c0_11, %c0_12] : memref<1x1x8xf32, #tpu.memory_space<vmem>>, vector<1x1x8xf32>
    %27 = arith.truncf %25 : vector<8x32xf32> to vector<8x32xbf16>
    %c0_13 = arith.constant 0 : index
    %c0_14 = arith.constant 0 : index
    %28 = vector.load %arg5[%c0_13, %c0_14] : memref<32x96xbf16, #tpu.memory_space<vmem>>, vector<32x96xbf16>
    %cst_15 = arith.constant dense<0.000000e+00> : vector<8x96xf32>
    %29 = tpu.matmul %27, %28, %cst_15 {dimension_numbers = #tpu.dot_dimension_numbers<[1], [0], [0], [1], [0, 0, 1, 1], [], []>} : vector<8x32xbf16>, vector<32x96xbf16>, vector<8x96xf32> -> vector<8x96xf32>
    %c0_16 = arith.constant 0 : index
    %c0_17 = arith.constant 0 : index
    %30 = vector.load %arg6[%c0_16, %c0_17] : memref<1x96xf32, #tpu.memory_space<vmem>>, vector<1x96xf32>
    %31 = vector.broadcast %30 : vector<1x96xf32> to vector<8x96xf32>
    %32 = arith.addf %29, %31 : vector<8x96xf32>
    %33 = vector.extract_strided_slice %32 {offsets = [0, 0], sizes = [8, 16], strides = [1, 1]} : vector<8x96xf32> to vector<8x16xf32>
    %34 = vector.shape_cast %33 : vector<8x16xf32> to vector<1x8x16xf32>
    %35 = vector.extract_strided_slice %32 {offsets = [0, 32], sizes = [8, 16], strides = [1, 1]} : vector<8x96xf32> to vector<8x16xf32>
    %36 = vector.shape_cast %35 : vector<8x16xf32> to vector<1x8x16xf32>
    %37 = vector.extract_strided_slice %32 {offsets = [0, 64], sizes = [8, 16], strides = [1, 1]} : vector<8x96xf32> to vector<8x16xf32>
    %38 = vector.shape_cast %37 : vector<8x16xf32> to vector<1x8x16xf32>
    %39 = arith.truncf %34 : vector<1x8x16xf32> to vector<1x8x16xbf16>
    %40 = arith.truncf %36 : vector<1x8x16xf32> to vector<1x8x16xbf16>
    "tpu.trace_start"() <{level = 10 : i32, message = "bqd,bkd->bqk"}> : () -> ()
    %cst_18 = arith.constant dense<0.000000e+00> : vector<1x8x8xf32>
    %41 = tpu.matmul %39, %40, %cst_18 {dimension_numbers = #tpu.dot_dimension_numbers<[2], [2], [1], [1], [0, 0, 0, 1, 1, 1], [0], [0]>} : vector<1x8x16xbf16>, vector<1x8x16xbf16>, vector<1x8x8xf32> -> vector<1x8x8xf32>
    "tpu.trace_stop"() : () -> ()
    %cst_19 = arith.constant 2.500000e-01 : f32
    %42 = vector.broadcast %cst_19 : f32 to vector<1x8x8xf32>
    %43 = arith.mulf %41, %42 : vector<1x8x8xf32>
    %44 = vector.broadcast %26 : vector<1x1x8xf32> to vector<1x8x8xf32>
    %45 = arith.addf %43, %44 : vector<1x8x8xf32>
    %cst_20 = arith.constant dense<0xFF800000> : vector<1x8xf32>
    %46 = vector.multi_reduction <maximumf>, %45, %cst_20 [2] : vector<1x8x8xf32> to vector<1x8xf32>
    %47 = vector.shape_cast %46 : vector<1x8xf32> to vector<1x8x1xf32>
    %48 = vector.broadcast %47 : vector<1x8x1xf32> to vector<1x8x8xf32>
    %49 = arith.subf %45, %48 : vector<1x8x8xf32>
    %50 = math.exp %49 : vector<1x8x8xf32>
    %cst_21 = arith.constant dense<0.000000e+00> : vector<1x8xf32>
    %51 = vector.multi_reduction <add>, %50, %cst_21 [2] : vector<1x8x8xf32> to vector<1x8xf32>
    %52 = vector.shape_cast %51 : vector<1x8xf32> to vector<1x8x1xf32>
    %53 = tpu.reciprocal %52 {approx = true} : vector<1x8x1xf32> -> vector<1x8x1xf32>
    %54 = vector.broadcast %53 : vector<1x8x1xf32> to vector<1x8x8xf32>
    %55 = arith.mulf %50, %54 : vector<1x8x8xf32>
    %56 = arith.truncf %55 : vector<1x8x8xf32> to vector<1x8x8xbf16>
    %57 = arith.truncf %38 : vector<1x8x16xf32> to vector<1x8x16xbf16>
    "tpu.trace_start"() <{level = 10 : i32, message = "bqk,bkd->bqd"}> : () -> ()
    %cst_22 = arith.constant dense<0.000000e+00> : vector<1x8x16xf32>
    %58 = tpu.matmul %56, %57, %cst_22 {dimension_numbers = #tpu.dot_dimension_numbers<[2], [1], [1], [2], [0, 0, 0, 1, 1, 2], [0], [0]>} : vector<1x8x8xbf16>, vector<1x8x16xbf16>, vector<1x8x16xf32> -> vector<1x8x16xf32>
    "tpu.trace_stop"() : () -> ()
    %59 = vector.shape_cast %58 : vector<1x8x16xf32> to vector<8x16xf32>
    %60 = vector.extract_strided_slice %32 {offsets = [0, 16], sizes = [8, 16], strides = [1, 1]} : vector<8x96xf32> to vector<8x16xf32>
    %61 = vector.shape_cast %60 : vector<8x16xf32> to vector<1x8x16xf32>
    %62 = vector.extract_strided_slice %32 {offsets = [0, 48], sizes = [8, 16], strides = [1, 1]} : vector<8x96xf32> to vector<8x16xf32>
    %63 = vector.shape_cast %62 : vector<8x16xf32> to vector<1x8x16xf32>
    %64 = vector.extract_strided_slice %32 {offsets = [0, 80], sizes = [8, 16], strides = [1, 1]} : vector<8x96xf32> to vector<8x16xf32>
    %65 = vector.shape_cast %64 : vector<8x16xf32> to vector<1x8x16xf32>
    %66 = arith.truncf %61 : vector<1x8x16xf32> to vector<1x8x16xbf16>
    %67 = arith.truncf %63 : vector<1x8x16xf32> to vector<1x8x16xbf16>
    "tpu.trace_start"() <{level = 10 : i32, message = "bqd,bkd->bqk"}> : () -> ()
    %cst_23 = arith.constant dense<0.000000e+00> : vector<1x8x8xf32>
    %68 = tpu.matmul %66, %67, %cst_23 {dimension_numbers = #tpu.dot_dimension_numbers<[2], [2], [1], [1], [0, 0, 0, 1, 1, 1], [0], [0]>} : vector<1x8x16xbf16>, vector<1x8x16xbf16>, vector<1x8x8xf32> -> vector<1x8x8xf32>
    "tpu.trace_stop"() : () -> ()
    %cst_24 = arith.constant 2.500000e-01 : f32
    %69 = vector.broadcast %cst_24 : f32 to vector<1x8x8xf32>
    %70 = arith.mulf %68, %69 : vector<1x8x8xf32>
    %71 = vector.broadcast %26 : vector<1x1x8xf32> to vector<1x8x8xf32>
    %72 = arith.addf %70, %71 : vector<1x8x8xf32>
    %cst_25 = arith.constant dense<0xFF800000> : vector<1x8xf32>
    %73 = vector.multi_reduction <maximumf>, %72, %cst_25 [2] : vector<1x8x8xf32> to vector<1x8xf32>
    %74 = vector.shape_cast %73 : vector<1x8xf32> to vector<1x8x1xf32>
    %75 = vector.broadcast %74 : vector<1x8x1xf32> to vector<1x8x8xf32>
    %76 = arith.subf %72, %75 : vector<1x8x8xf32>
    %77 = math.exp %76 : vector<1x8x8xf32>
    %cst_26 = arith.constant dense<0.000000e+00> : vector<1x8xf32>
    %78 = vector.multi_reduction <add>, %77, %cst_26 [2] : vector<1x8x8xf32> to vector<1x8xf32>
    %79 = vector.shape_cast %78 : vector<1x8xf32> to vector<1x8x1xf32>
    %80 = tpu.reciprocal %79 {approx = true} : vector<1x8x1xf32> -> vector<1x8x1xf32>
    %81 = vector.broadcast %80 : vector<1x8x1xf32> to vector<1x8x8xf32>
    %82 = arith.mulf %77, %81 : vector<1x8x8xf32>
    %83 = arith.truncf %82 : vector<1x8x8xf32> to vector<1x8x8xbf16>
    %84 = arith.truncf %65 : vector<1x8x16xf32> to vector<1x8x16xbf16>
    "tpu.trace_start"() <{level = 10 : i32, message = "bqk,bkd->bqd"}> : () -> ()
    %cst_27 = arith.constant dense<0.000000e+00> : vector<1x8x16xf32>
    %85 = tpu.matmul %83, %84, %cst_27 {dimension_numbers = #tpu.dot_dimension_numbers<[2], [1], [1], [2], [0, 0, 0, 1, 1, 2], [0], [0]>} : vector<1x8x8xbf16>, vector<1x8x16xbf16>, vector<1x8x16xf32> -> vector<1x8x16xf32>
    "tpu.trace_stop"() : () -> ()
    %86 = vector.shape_cast %85 : vector<1x8x16xf32> to vector<8x16xf32>
    %87 = tpu.concatenate %59, %86 in 1 : vector<8x16xf32>, vector<8x16xf32> -> vector<8x32xf32>
    %88 = arith.truncf %87 : vector<8x32xf32> to vector<8x32xbf16>
    %c0_28 = arith.constant 0 : index
    %c0_29 = arith.constant 0 : index
    %89 = vector.load %arg7[%c0_28, %c0_29] : memref<32x32xbf16, #tpu.memory_space<vmem>>, vector<32x32xbf16>
    %cst_30 = arith.constant dense<0.000000e+00> : vector<8x32xf32>
    %90 = tpu.matmul %88, %89, %cst_30 {dimension_numbers = #tpu.dot_dimension_numbers<[1], [0], [0], [1], [0, 0, 1, 1], [], []>} : vector<8x32xbf16>, vector<32x32xbf16>, vector<8x32xf32> -> vector<8x32xf32>
    %c0_31 = arith.constant 0 : index
    %c0_32 = arith.constant 0 : index
    %91 = vector.load %arg8[%c0_31, %c0_32] : memref<1x32xf32, #tpu.memory_space<vmem>>, vector<1x32xf32>
    %92 = vector.broadcast %91 : vector<1x32xf32> to vector<8x32xf32>
    %93 = arith.addf %90, %92 : vector<8x32xf32>
    %94 = arith.addf %93, %25 : vector<8x32xf32>
    %c0_33 = arith.constant 0 : index
    %c0_34 = arith.constant 0 : index
    %95 = vector.load %arg9[%c0_33, %c0_34] : memref<1x32xf32, #tpu.memory_space<vmem>>, vector<1x32xf32>
    %c0_35 = arith.constant 0 : index
    %c0_36 = arith.constant 0 : index
    %96 = vector.load %arg10[%c0_35, %c0_36] : memref<1x32xf32, #tpu.memory_space<vmem>>, vector<1x32xf32>
    %cst_37 = arith.constant dense<0.000000e+00> : vector<8xf32>
    %97 = vector.multi_reduction <add>, %94, %cst_37 [1] : vector<8x32xf32> to vector<8xf32>
    %98 = vector.shape_cast %97 : vector<8xf32> to vector<8x1xf32>
    %cst_38 = arith.constant 3.200000e+01 : f32
    %99 = vector.broadcast %cst_38 : f32 to vector<8x1xf32>
    %100 = arith.divf %98, %99 : vector<8x1xf32>
    %101 = vector.broadcast %100 : vector<8x1xf32> to vector<8x32xf32>
    %102 = arith.subf %94, %101 : vector<8x32xf32>
    %103 = arith.mulf %102, %102 : vector<8x32xf32>
    %cst_39 = arith.constant dense<0.000000e+00> : vector<8xf32>
    %104 = vector.multi_reduction <add>, %103, %cst_39 [1] : vector<8x32xf32> to vector<8xf32>
    %105 = vector.shape_cast %104 : vector<8xf32> to vector<8x1xf32>
    %cst_40 = arith.constant 3.200000e+01 : f32
    %106 = vector.broadcast %cst_40 : f32 to vector<8x1xf32>
    %107 = arith.divf %105, %106 : vector<8x1xf32>
    %108 = vector.broadcast %100 : vector<8x1xf32> to vector<8x32xf32>
    %109 = arith.subf %94, %108 : vector<8x32xf32>
    %cst_41 = arith.constant 9.99999996E-13 : f32
    %110 = vector.broadcast %cst_41 : f32 to vector<8x1xf32>
    %111 = arith.addf %107, %110 : vector<8x1xf32>
    %112 = math.rsqrt %111 : vector<8x1xf32>
    %113 = vector.broadcast %112 : vector<8x1xf32> to vector<8x32xf32>
    %114 = arith.mulf %109, %113 : vector<8x32xf32>
    %115 = vector.broadcast %95 : vector<1x32xf32> to vector<8x32xf32>
    %116 = arith.mulf %114, %115 : vector<8x32xf32>
    %117 = vector.broadcast %96 : vector<1x32xf32> to vector<8x32xf32>
    %118 = arith.addf %116, %117 : vector<8x32xf32>
    %119 = arith.truncf %118 : vector<8x32xf32> to vector<8x32xbf16>
    %c0_42 = arith.constant 0 : index
    %c0_43 = arith.constant 0 : index
    %120 = vector.load %arg11[%c0_42, %c0_43] : memref<32x128xbf16, #tpu.memory_space<vmem>>, vector<32x128xbf16>
    %cst_44 = arith.constant dense<0.000000e+00> : vector<8x128xf32>
    %121 = tpu.matmul %119, %120, %cst_44 {dimension_numbers = #tpu.dot_dimension_numbers<[1], [0], [0], [1], [0, 0, 1, 1], [], []>} : vector<8x32xbf16>, vector<32x128xbf16>, vector<8x128xf32> -> vector<8x128xf32>
    %c0_45 = arith.constant 0 : index
    %c0_46 = arith.constant 0 : index
    %122 = vector.load %arg12[%c0_45, %c0_46] : memref<1x128xf32, #tpu.memory_space<vmem>>, vector<1x128xf32>
    %123 = vector.broadcast %122 : vector<1x128xf32> to vector<8x128xf32>
    %124 = arith.addf %121, %123 : vector<8x128xf32>
    %125 = arith.mulf %124, %124 : vector<8x128xf32>
    %126 = arith.mulf %124, %125 : vector<8x128xf32>
    %cst_47 = arith.constant 4.471500e-02 : f32
    %127 = vector.broadcast %cst_47 : f32 to vector<8x128xf32>
    %128 = arith.mulf %127, %126 : vector<8x128xf32>
    %129 = arith.addf %124, %128 : vector<8x128xf32>
    %cst_48 = arith.constant 0.797884583 : f32
    %130 = vector.broadcast %cst_48 : f32 to vector<8x128xf32>
    %131 = arith.mulf %130, %129 : vector<8x128xf32>
    %132 = math.tanh %131 : vector<8x128xf32>
    %cst_49 = arith.constant 1.000000e+00 : f32
    %133 = vector.broadcast %cst_49 : f32 to vector<8x128xf32>
    %134 = arith.addf %133, %132 : vector<8x128xf32>
    %cst_50 = arith.constant 5.000000e-01 : f32
    %135 = vector.broadcast %cst_50 : f32 to vector<8x128xf32>
    %136 = arith.mulf %135, %134 : vector<8x128xf32>
    %137 = arith.mulf %124, %136 : vector<8x128xf32>
    %138 = arith.truncf %137 : vector<8x128xf32> to vector<8x128xbf16>
    %c0_51 = arith.constant 0 : index
    %c0_52 = arith.constant 0 : index
    %139 = vector.load %arg13[%c0_51, %c0_52] : memref<128x32xbf16, #tpu.memory_space<vmem>>, vector<128x32xbf16>
    %cst_53 = arith.constant dense<0.000000e+00> : vector<8x32xf32>
    %140 = tpu.matmul %138, %139, %cst_53 {dimension_numbers = #tpu.dot_dimension_numbers<[1], [0], [0], [1], [0, 0, 1, 1], [], []>} : vector<8x128xbf16>, vector<128x32xbf16>, vector<8x32xf32> -> vector<8x32xf32>
    %c0_54 = arith.constant 0 : index
    %c0_55 = arith.constant 0 : index
    %141 = vector.load %arg14[%c0_54, %c0_55] : memref<1x32xf32, #tpu.memory_space<vmem>>, vector<1x32xf32>
    %142 = vector.broadcast %141 : vector<1x32xf32> to vector<8x32xf32>
    %143 = arith.addf %140, %142 : vector<8x32xf32>
    %144 = arith.addf %143, %118 : vector<8x32xf32>
    %c0_56 = arith.constant 0 : index
    %c0_57 = arith.constant 0 : index
    %145 = vector.load %arg15[%c0_56, %c0_57] : memref<1x32xf32, #tpu.memory_space<vmem>>, vector<1x32xf32>
    %c0_58 = arith.constant 0 : index
    %c0_59 = arith.constant 0 : index
    %146 = vector.load %arg16[%c0_58, %c0_59] : memref<1x32xf32, #tpu.memory_space<vmem>>, vector<1x32xf32>
    %cst_60 = arith.constant dense<0.000000e+00> : vector<8xf32>
    %147 = vector.multi_reduction <add>, %144, %cst_60 [1] : vector<8x32xf32> to vector<8xf32>
    %148 = vector.shape_cast %147 : vector<8xf32> to vector<8x1xf32>
    %cst_61 = arith.constant 3.200000e+01 : f32
    %149 = vector.broadcast %cst_61 : f32 to vector<8x1xf32>
    %150 = arith.divf %148, %149 : vector<8x1xf32>
    %151 = vector.broadcast %150 : vector<8x1xf32> to vector<8x32xf32>
    %152 = arith.subf %144, %151 : vector<8x32xf32>
    %153 = arith.mulf %152, %152 : vector<8x32xf32>
    %cst_62 = arith.constant dense<0.000000e+00> : vector<8xf32>
    %154 = vector.multi_reduction <add>, %153, %cst_62 [1] : vector<8x32xf32> to vector<8xf32>
    %155 = vector.shape_cast %154 : vector<8xf32> to vector<8x1xf32>
    %cst_63 = arith.constant 3.200000e+01 : f32
    %156 = vector.broadcast %cst_63 : f32 to vector<8x1xf32>
    %157 = arith.divf %155, %156 : vector<8x1xf32>
    %158 = vector.broadcast %150 : vector<8x1xf32> to vector<8x32xf32>
    %159 = arith.subf %144, %158 : vector<8x32xf32>
    %cst_64 = arith.constant 9.99999996E-13 : f32
    %160 = vector.broadcast %cst_64 : f32 to vector<8x1xf32>
    %161 = arith.addf %157, %160 : vector<8x1xf32>
    %162 = math.rsqrt %161 : vector<8x1xf32>
    %163 = vector.broadcast %162 : vector<8x1xf32> to vector<8x32xf32>
    %164 = arith.mulf %159, %163 : vector<8x32xf32>
    %165 = vector.broadcast %145 : vector<1x32xf32> to vector<8x32xf32>
    %166 = arith.mulf %164, %165 : vector<8x32xf32>
    %167 = vector.broadcast %146 : vector<1x32xf32> to vector<8x32xf32>
    %168 = arith.addf %166, %167 : vector<8x32xf32>
    %169 = vector.shape_cast %168 : vector<8x32xf32> to vector<1x8x32xf32>
    %c0_65 = arith.constant 0 : index
    %c0_66 = arith.constant 0 : index
    %c0_67 = arith.constant 0 : index
    %170 = vector.load %arg17[%c0_65, %c0_66, %c0_67] : memref<1x8x32xf32, #tpu.memory_space<vmem>>, vector<1x8x32xf32>
    tpu.vector_store %arg17[%c0_65, %c0_66, %c0_67], %169 {strides = array<i32>} : memref<1x8x32xf32, #tpu.memory_space<vmem>>, vector<1x8x32xf32>,
    return
  }
  func.func @transform_0(%arg0: i32) -> (i32, i32, i32) {
    %c0_i32 = arith.constant 0 : i32
    %c0_i32_0 = arith.constant 0 : i32
    %c0_i32_1 = arith.constant 0 : i32
    return %arg0, %c0_i32, %c0_i32_0 : i32, i32, i32
  }
  func.func @transform_1(%arg0: i32) -> (i32, i32, i32) {
    %c0_i32 = arith.constant 0 : i32
    %c0_i32_0 = arith.constant 0 : i32
    %c0_i32_1 = arith.constant 0 : i32
    return %arg0, %c0_i32, %c0_i32_0 : i32, i32, i32
  }
  func.func @transform_2(%arg0: i32) -> (i32, i32) {
    %c0_i32 = arith.constant 0 : i32
    %c0_i32_0 = arith.constant 0 : i32
    %c0_i32_1 = arith.constant 0 : i32
    return %c0_i32, %c0_i32_0 : i32, i32
  }
  func.func @transform_3(%arg0: i32) -> (i32, i32) {
    %c0_i32 = arith.constant 0 : i32
    %c0_i32_0 = arith.constant 0 : i32
    %c0_i32_1 = arith.constant 0 : i32
    return %c0_i32, %c0_i32_0 : i32, i32
  }
  func.func @transform_4(%arg0: i32) -> (i32, i32) {
    %c0_i32 = arith.constant 0 : i32
    %c0_i32_0 = arith.constant 0 : i32
    %c0_i32_1 = arith.constant 0 : i32
    return %c0_i32, %c0_i32_0 : i32, i32
  }
  func.func @transform_5(%arg0: i32) -> (i32, i32) {
    %c0_i32 = arith.constant 0 : i32
    %c0_i32_0 = arith.constant 0 : i32
    %c0_i32_1 = arith.constant 0 : i32
    return %c0_i32, %c0_i32_0 : i32, i32
  }
  func.func @transform_6(%arg0: i32) -> (i32, i32) {
    %c0_i32 = arith.constant 0 : i32
    %c0_i32_0 = arith.constant 0 : i32
    %c0_i32_1 = arith.constant 0 : i32
    return %c0_i32, %c0_i32_0 : i32, i32
  }
  func.func @transform_7(%arg0: i32) -> (i32, i32) {
    %c0_i32 = arith.constant 0 : i32
    %c0_i32_0 = arith.constant 0 : i32
    %c0_i32_1 = arith.constant 0 : i32
    return %c0_i32, %c0_i32_0 : i32, i32
  }
  func.func @transform_8(%arg0: i32) -> (i32, i32) {
    %c0_i32 = arith.constant 0 : i32
    %c0_i32_0 = arith.constant 0 : i32
    %c0_i32_1 = arith.constant 0 : i32
    return %c0_i32, %c0_i32_0 : i32, i32
  }
  func.func @transform_9(%arg0: i32) -> (i32, i32) {
    %c0_i32 = arith.constant 0 : i32
    %c0_i32_0 = arith.constant 0 : i32
    %c0_i32_1 = arith.constant 0 : i32
    return %c0_i32, %c0_i32_0 : i32, i32
  }
  func.func @transform_10(%arg0: i32) -> (i32, i32) {
    %c0_i32 = arith.constant 0 : i32
    %c0_i32_0 = arith.constant 0 : i32
    %c0_i32_1 = arith.constant 0 : i32
    return %c0_i32, %c0_i32_0 : i32, i32
  }
  func.func @transform_11(%arg0: i32) -> (i32, i32) {
    %c0_i32 = arith.constant 0 : i32
    %c0_i32_0 = arith.constant 0 : i32
    %c0_i32_1 = arith.constant 0 : i32
    return %c0_i32, %c0_i32_0 : i32, i32
  }
  func.func @transform_12(%arg0: i32) -> (i32, i32) {
    %c0_i32 = arith.constant 0 : i32
    %c0_i32_0 = arith.constant 0 : i32
    %c0_i32_1 = arith.constant 0 : i32
    return %c0_i32, %c0_i32_0 : i32, i32
  }
  func.func @transform_13(%arg0: i32) -> (i32, i32) {
    %c0_i32 = arith.constant 0 : i32
    %c0_i32_0 = arith.constant 0 : i32
    %c0_i32_1 = arith.constant 0 : i32
    return %c0_i32, %c0_i32_0 : i32, i32
  }
  func.func @transform_14(%arg0: i32) -> (i32, i32) {
    %c0_i32 = arith.constant 0 : i32
    %c0_i32_0 = arith.constant 0 : i32
    %c0_i32_1 = arith.constant 0 : i32
    return %c0_i32, %c0_i32_0 : i32, i32
  }
  func.func @transform_15(%arg0: i32) -> (i32, i32) {
    %c0_i32 = arith.constant 0 : i32
    %c0_i32_0 = arith.constant 0 : i32
    %c0_i32_1 = arith.constant 0 : i32
    return %c0_i32, %c0_i32_0 : i32, i32
  }
  func.func @transform_16(%arg0: i32) -> (i32, i32, i32) {
    %c0_i32 = arith.constant 0 : i32
    %c0_i32_0 = arith.constant 0 : i32
    %c0_i32_1 = arith.constant 0 : i32
    return %arg0, %c0_i32, %c0_i32_0 : i32, i32, i32
  }
}

</mosaic_0001>

<bundles_post_ra>
// kernel: bert_classifier_forward.3
= control target key start
LH: loop header
LB: loop body
LE: loop exit
PB: predicated region body
PF: predicated region fallthrough
CT: control target
= control target key end

     0   :  { %s2077_s0 = inlined_call_operand.vmem [shape: f32[2,8,32], index: 0, kind: input, shape index: {}]   ;;  %s2078_s1 = inlined_call_operand.vmem [shape: f32[2,1,8], index: 1, kind: input, shape index: {}]   ;;  %s2079_s2 = inlined_call_operand.vmem [shape: bf16[32,96], index: 2, kind: input, shape index: {}]   ;;  %s2080_s3 = inlined_call_operand.vmem [shape: f32[1,96], index: 3, kind: input, shape index: {}]   ;;  %s2081_s4 = inlined_call_operand.vmem [shape: bf16[32,32], index: 4, kind: input, shape index: {}]   ;;  %s2082_s5 = inlined_call_operand.vmem [shape: f32[1,32], index: 5, kind: input, shape index: {}]   ;;  %s2083_s6 = inlined_call_operand.vmem [shape: f32[1,32], index: 6, kind: input, shape index: {}]   ;;  %s2084_s7 = inlined_call_operand.vmem [shape: f32[1,32], index: 7, kind: input, shape index: {}]   ;;  %s2085_s8 = inlined_call_operand.vmem [shape: bf16[32,128], index: 8, kind: input, shape index: {}]   ;;  %s2086_s9 = inlined_call_operand.vmem [shape: f32[1,128], index: 9, kind: input, shape index: {}]   ;;  %s2087_s10 = inlined_call_operand.vmem [shape: bf16[128,32], index: 10, kind: input, shape index: {}]   ;;  %s2088_s11 = inlined_call_operand.vmem [shape: f32[1,32], index: 11, kind: input, shape index: {}]   ;;  %s2089_s12 = inlined_call_operand.vmem [shape: f32[1,32], index: 12, kind: input, shape index: {}]   ;;  %s2090_s13 = inlined_call_operand.vmem [shape: f32[1,32], index: 13, kind: input, shape index: {}]   ;;  %s2091_s14 = inlined_call_operand.vmem [shape: bf16[32,32], index: 14, kind: input, shape index: {}]   ;;  %s2092_s15 = inlined_call_operand.vmem [shape: f32[1,32], index: 15, kind: input, shape index: {}]   ;;  %s2093_s16 = inlined_call_operand.vmem [shape: bf16[32,128], index: 16, kind: input, shape index: {}]   ;;  %s2094_s17 = inlined_call_operand.vmem [shape: f32[1,128], index: 17, kind: input, shape index: {}]   ;;  %s2095_s18 = inlined_call_operand.hbm [shape: f32[2,1,128], index: 18, kind: output, shape index: {}]  }
   0x1   :  { %2099 = sst [smem:[#allocation7_spill]] %s2077_s0 }
   0x2   :  { %2100 = sst [smem:[#allocation8_spill]] %s2078_s1 }
   0x3   :  { %2101 = sst [smem:[#allocation9_spill]] %s2079_s2 }
   0x4   :  { %2102 = sst [smem:[#allocation10_spill]] %s2080_s3 }
   0x5   :  { %2103 = sst [smem:[#allocation11_spill]] %s2081_s4 }
   0x6   :  { %23 = vsyncpa [#allocation3], 0 }
   0x7   :  { %25 = vsyncpa [#allocation3 + $0x1], 0  ;;  %s1819_s27 = smov 0   ;;  %s1821_s28 = smov 0  }
   0x8   :  { %s1823_s29 = smov 0   ;;  %s1825_s30 = smov 0  }
   0x9 LB: > { %2104 = sst [smem:[#allocation5_spill]] %s1709_s29  ;;  %s1840_s0 = sadd.s32 4294967295, %s1713_s30   ;;  %s1713_s30 = sphi %s1825_s30, %s2117_s30   ;;  %s1709_s29 = sphi %s1823_s29, %s2114_s29   ;;  %s1705_s28 = sphi %s1821_s28, %s2116_s28   ;;  %s1701_s27 = sphi %s1819_s27, %s2115_s27  }
   0xa   : > { %s1410_s19 = sadd.s32 4294967294, %s1713_s30   ;;  %s1844_s1 = sadd.s32 1, %s1713_s30  }
   0xb   : > { %s426_s20 = sadd.s32 1, %s1709_s29  ;;  %s423_s21 = ssub.s32 %s1713_s30, %s1844_s1 }
   0xc   : > { %p436_p0 = scmp.ne.s32.totalorder %s1709_s29, %s1705_s28  ;;  %p424_p1 = scmp.eq.s32.totalorder %s423_s21, 0 }
   0xd   : > { %p437_p2 = scmp.eq.s32.totalorder %s1840_s0, 1  ;;  %p442_p3 = scmp.ne.s32.totalorder %s1705_s28, %s1701_s27 }
   0xe   : > { %p443_p4 = scmp.eq.s32.totalorder %s1410_s19, 1  ;;  %p1413_p7 = scmp.ge.s32.totalorder %s1713_s30, 1 }
   0xf   : > { %s1855_s22 = scalar_select %p424_p1, %s1709_s29, %s426_s20  }
  0x10   : > { %p1857_p5 = por %p437_p2, %p436_p0  ;;  %p1861_p6 = por %p443_p4, %p442_p3 }
  0x11   : > { %2105 = sst [smem:[#allocation6_spill]] %s1855_s22  ;;  %p522_p8 = scmp.lt.s32.totalorder %s1713_s30, 3 }
  0x13   : > { %p523_p9 = pnand %p1413_p7, %p522_p8 }
  0x14   : > { %s2108_s26 = sld [smem:[#allocation9_spill]] (!%p523_p9)  ;;  %v1715_v1 = vmov (!%p523_p9), 0.0   ;;  %vm1716_vm0 = vmmov (!%p523_p9), 0   ;;  %p577_p10 = scmp.lt.s32.totalorder (!%p523_p9), %s1840_s0, 1  ;;  %vm611_vm1 = vcmask (!%p523_p9), 261120   ;;  %vm659_vm2 = vcmask (!%p523_p9), 130048  }
  0x15   : > { %526 = sbr.rel (%p523_p9) target bundleno = 3004 (0xbbc), region = 92  ;;  %1486 = vmatprep.subr.bf16.mxu0 (!%p523_p9), %v1715_v1  ;;  %1494 = vmatprep.subr.bf16.mxu1 (!%p523_p9), %v1715_v1  ;;  %s2109_s29 = sld [smem:[#allocation7_spill]] (!%p523_p9)  ;;  %vm714_vm3 = vcmask (!%p523_p9), 64512   ;;  %vm732_vm4 = vcmask (!%p523_p9), 1043456  }
  0x16   : > { %1490 = vmatprep.mubr.msk.bf16.mxu0 (!%p523_p9), %vm1716_vm0, %v1715_v1  ;;  %1496 = vmatprep.mubr.msk.bf16.mxu1 (!%p523_p9), %vm1716_vm0, %v1715_v1  ;;  %s2110_s3 = sld [smem:[#allocation10_spill]] (!%p523_p9)  ;;  %s1718_s22 = smov (!%p523_p9), 96  }
  0x17   : > { %s2112_s4 = sld [smem:[#allocation11_spill]] (!%p523_p9)  ;;  %s1723_s25 = smov (!%p523_p9), [#allocation2]  }
  0x1a   : > { %v1617_v0 = vld [vmem:[%s2108_s26] sm:$0xff] (!%p523_p9)   ;;  %v1618_v2 = vld [vmem:[%s2108_s26 + $0x8] sm:$0xff] (!%p523_p9)  }
  0x1b   : > { %1487 = vmatpush3.bf16.msra.mxu0 (!%p523_p9), %v1617_v0 }
  0x1c   : > { %1488 = vmatprep.subr.bf16.mxu0 %v1715_v1  ;;  %s1882_s21 = scalar_select %p577_p10, %s1840_s0, 1  ;;  %v1415_v5 = vld [vmem:[%s2110_s3] ss:$0 sm:$0xff] }
  0x1d   : > { %v1619_v54 = vld [vmem:[%s2112_s4] sm:$0xff]   ;;  %v1620_v55 = vld [vmem:[%s2112_s4 + $0x8] sm:$0xff]   ;;  %s1655_s4 = sshll.u32 %s1723_s25, 4  ;;  %s1656_s4 = int_to_ptr.vmem [resolvable:$false] %s1655_s4 }
  0x1e   : > { %s1414_s24 = sshll.u32 %s1882_s21, 3 }
  0x1f   : > { %1489 = vmatpush3.bf16.msra.mxu0 %v1618_v2  ;;  %s580_s19 = scalar_lea.vmem %s2109_s29, %s1414_s24  ;;  %s1717_s29 = smov 112  }
  0x20   : > { %1500 = vmatprep.subr.bf16.mxu0 %v1715_v1  ;;  %v1889_v3 = vld [vmem:[%s580_s19] sm:$0xff]  ;;  %s1719_s24 = smov 80   ;;  %s2111_s19 = sld [smem:[#allocation8_spill]] }
  0x21   : > { %v587_v4 = vpack.c.bf16 %v1889_v3, %v1889_v3 }
  0x23   : > { %1491 = vmatmul.mubr.msk.bf16.vlgmr.msra.gmra.mrb[0].mxu0 %vm611_vm1, %v587_v4 }
  0x24   : > { %1502 = vmatprep.mubr.msk.bf16.mxu0 %vm1716_vm0, %v1715_v1 }
  0x26   : > { %s583_s20 = scalar_lea.vmem %s2111_s19, %s1882_s21  ;;  %s1720_s21 = smov 64  }
  0x27   : > { %v1420_v18 = vld [vmem:[%s583_s20] ss:$0 sm:$0xff]  ;;  %s1722_s19 = smov 16  }
  0xf6   : > { %v649_v6 = vpop.f32.mrb[0].mxu0 }
  0xf7   : > { %v650_v7 = vadd.f32 %v1415_v5, %v649_v6  ;;  %v1492_v8 = vpop.f32.mrb[1].mxu0  ;;  %v1424_v5 = vld [vmem:[%s2082_s5] ss:$0 sm:$0xff] }
  0xf8   : > { %v652_v9 = vpop.f32.mrb[2].mxu0 }
  0xf9   : > { %v655_v10 = vpack.c.bf16 %v650_v7, %v650_v7  ;;  %v1493_v11 = vpop.f32.mrb[3].mxu0 }
  0xfb   : > { %776 = vrot.lane.b32.xlu1 %v655_v10, %s1717_s29  ;;  %657 = vrot.lane.b32.xlu0 %v655_v10, %s1718_s22  ;;  %s1721_s29 = smov 48  }
  0xff   : > { %778 = vrot.lane.b32.xlu0 %v655_v10, %s1719_s24  ;;  %s575_s24 = sand.u32 1, %s1705_s28  }
 0x100   : > { %s576_s20 = scalar_lea.vmem [#allocation2], %s575_s24  ;;  %s1334_s26 = scalar_lea.sflag [#allocation3], %s575_s24 }
 0x16d   : > { %v658_v12 = vpop.permute.xlu0 %657  ;;  %v777_v16 = vpop.permute.xlu1 %776 }
 0x16e   : > { %v664_v13 = vsel %vm659_vm2, %v658_v12, 0 }
 0x16f   : > { %1495 = vmatpush3.bf16.xpose.msra.mxu1 %v664_v13 }
 0x170   : > { %1506 = vmatprep.subr.bf16.mxu1 %v1715_v1 }
 0x171   : > { %v779_v14 = vpop.permute.xlu0 %778 }
 0x172   : > { %v784_v15 = vsel %vm659_vm2, %v779_v14, 0 }
 0x176   : > { %1497 = vmatmul.mubr.msk.bf16.vlgmr.msra.gmra.mrb[0].mxu1 %vm659_vm2, %v655_v10 }
 0x177   : > { %1507 = vmatpush3.bf16.xpose.msra.mxu1 %v784_v15  ;;  %1508 = vmatprep.mubr.msk.bf16.mxu1 %vm1716_vm0, %v1715_v1 }
 0x178   : > { %1518 = vmatprep.subr.bf16.mxu1 %v1715_v1 }
 0x17e   : > { %1509 = vmatmul.mubr.msk.bf16.vlgmr.msra.gmra.mrb[4].mxu1 %vm659_vm2, %v777_v16 }
 0x17f   : > { %1522 = vmatprep.mubr.msk.bf16.mxu1 %vm1716_vm0, %v1715_v1  ;;  %1519 = vmatpush3.bf16.msra.mxu1 %v1619_v54 }
 0x180   : > { %1520 = vmatprep.subr.bf16.mxu1 %v1715_v1 }
 0x183   : > { %1521 = vmatpush3.bf16.msra.mxu1 %v1620_v55 }
 0x184   : > { %1534 = vmatprep.subr.bf16.mxu1 %v1715_v1 }
 0x249   : > { %v700_v17 = vpop.f32.mrb[0].mxu1 }
 0x24a   : > { %v706_v19 = vmul.f32 0.25, %v700_v17  ;;  %v1498_v20 = vpop.f32.mrb[1].mxu1 }
 0x24b   : > { %v703_v21 = vpop.f32.mrb[2].mxu1 }
 0x24c   : > { %v1499_v22 = vpop.f32.mrb[3].mxu1  ;;  %v713_v23 = vadd.f32 %v1420_v18, %v706_v19  ;;  %v1622_v19 = vld [vmem:[%s2085_s8 + $0x8] sm:$0xff]  }
 0x24e   : > { %v715_v24 = vsel %vm714_vm3, %v713_v23, -inf }
 0x24f   : > { %716 = vmax.xlane.f32.xlu1 %v715_v24 }
 0x251   : > { %v820_v25 = vpop.f32.mrb[4].mxu1 }
 0x252   : > { %v826_v26 = vmul.f32 0.25, %v820_v25  ;;  %v1510_v27 = vpop.f32.mrb[5].mxu1  ;;  %v1429_v25 = vld [vmem:[%s2084_s7] ss:$0 sm:$0xff] }
 0x253   : > { %v823_v28 = vpop.f32.mrb[6].mxu1 }
 0x254   : > { %v1511_v29 = vpop.f32.mrb[7].mxu1  ;;  %v827_v30 = vadd.f32 %v1420_v18, %v826_v26  ;;  %v1621_v18 = vld [vmem:[%s2085_s8] sm:$0xff]  }
 0x255   : > { %v1623_v29 = vld [vmem:[%s2087_s10] sm:$0xff]  }
 0x256   : > { %v828_v31 = vsel %vm714_vm3, %v827_v30, -inf }
 0x257   : > { %829 = vmax.xlane.f32.xlu0 %v828_v31  ;;  %v1625_v31 = vld [vmem:[%s2087_s10 + $0x10] sm:$0xff]  }
 0x2dc   : > { %v717_v32 = vpop.xlane.xlu1 %716 }
 0x2dd   : > { %v718_v33 = vsub.f32 %v713_v23, %v717_v32  ;;  %v1428_v23 = vld [vmem:[%s2083_s6] ss:$0 sm:$0xff]  ;;  %v1626_v32 = vld [vmem:[%s2087_s10 + $0x18] sm:$0xff]  }
 0x2df   : > { %v719_v34 = vmul.f32 1.442695, %v718_v33  ;;  %v1627_v33 = vld [vmem:[%s2087_s10 + $0x20] sm:$0xff]  }
 0x2e1   : > { %1635 = vpow2.f32 %v719_v34  ;;  %v1628_v34 = vld [vmem:[%s2087_s10 + $0x28] sm:$0xff]  }
 0x2e4   : > { %v830_v35 = vpop.xlane.xlu0 %829 }
 0x2e5   : > { %v831_v36 = vsub.f32 %v827_v30, %v830_v35  ;;  %v1624_v30 = vld [vmem:[%s2087_s10 + $0x8] sm:$0xff]   ;;  %v1629_v35 = vld [vmem:[%s2087_s10 + $0x30] sm:$0xff]  }
 0x2e7   : > { %v832_v37 = vmul.f32 1.442695, %v831_v36  ;;  %v1630_v36 = vld [vmem:[%s2087_s10 + $0x38] sm:$0xff]  }
 0x2e9   : > { %1637 = vpow2.f32 %v832_v37  ;;  %v1430_v37 = vld [vmem:[%s2086_s9] ss:$0 sm:$0xff] }
 0x2eb   : > { %v1636_v38 = vpop.eup %1635 }
 0x2ec   : > { %v721_v39 = vsel %vm714_vm3, %v1636_v38, 0.0 }
 0x2ed   : > { %722 = vadd.xlane.f32.xlu0 %v721_v39 }
 0x2f3   : > { %v1638_v40 = vpop.eup %1637 }
 0x2f4   : > { %v834_v41 = vsel %vm714_vm3, %v1638_v40, 0.0 }
 0x2f5   : > { %835 = vadd.xlane.f32.xlu1 %v834_v41 }
 0x303   : > { %727 = vrot.lane.b32.xlu0 %v655_v10, %s1720_s21  ;;  %s1346_s21 = sshll.u32 %s576_s20, 4  ;;  %s2037_s21 = int_to_ptr.vmem [resolvable:$true] %s1346_s21 }
 0x304   : > { %p1658_p0 = scmp.lt.s32.totalorder %s2037_s21, %s1656_s4 }
 0x306   : > { %840 = vrot.lane.b32.xlu1 %v655_v10, %s1721_s29  ;;  %s1657_s29 = scalar_lea.vmem %s1656_s4, 32 }
 0x37a   : > { %v723_v42 = vpop.xlane.xlu0 %722 }
 0x37b   : > { %1639 = vrcp.f32 %v723_v42 }
 0x37e   : > { %v728_v43 = vpop.permute.xlu0 %727 }
 0x37f   : > { %v734_v44 = vsel %vm732_vm4, %v728_v43, 0 }
 0x380   : > { %1501 = vmatpush3.bf16.msra.mxu0 %v734_v44 }
 0x381   : > { %1512 = vmatprep.subr.bf16.mxu0 %v1715_v1 }
 0x382   : > { %v836_v45 = vpop.xlane.xlu1 %835 }
 0x383   : > { %1641 = vrcp.f32 %v836_v45 }
 0x385   : > { %v1640_v46 = vpop.eup %1639 }
 0x386   : > { %v725_v47 = vmul.f32 %v1640_v46, %v1636_v38  ;;  %v841_v48 = vpop.permute.xlu1 %840 }
 0x387   : > { %v846_v50 = vsel %vm732_vm4, %v841_v48, 0 }
 0x388   : > { %v726_v49 = vpack.c.bf16 %v725_v47, %v725_v47 }
 0x38a   : > { %1503 = vmatmul.mubr.msk.bf16.vlgmr.msra.gmra.mrb[4].mxu0 %vm714_vm3, %v726_v49 }
 0x38b   : > { %1513 = vmatpush3.bf16.msra.mxu0 %v846_v50  ;;  %1514 = vmatprep.mubr.msk.bf16.mxu0 %vm1716_vm0, %v1715_v1 }
 0x38c   : > { %1526 = vmatprep.subr.bf16.mxu0 %v1715_v1 }
 0x38d   : > { %v1642_v51 = vpop.eup %1641 }
 0x38e   : > { %v838_v52 = vmul.f32 %v1642_v51, %v1638_v40 }
 0x390   : > { %v839_v53 = vpack.c.bf16 %v838_v52, %v838_v52 }
 0x392   : > { %1515 = vmatmul.mubr.msk.bf16.vlgmr.msra.gmra.mrb[8].mxu0 %vm714_vm3, %v839_v53  ;;  %v1434_v53 = vld [vmem:[%s2088_s11] ss:$0 sm:$0xff] }
 0x393   : > { %1530 = vmatprep.mubr.msk.bf16.mxu0 %vm1716_vm0, %v1715_v1  ;;  %1527 = vmatpush3.bf16.msra.mxu0 %v1621_v18  ;;  %v1214_v18 = vld [vmem:[%s2092_s15] sm:$0x1] }
 0x394   : > { %1528 = vmatprep.subr.bf16.mxu0 %v1715_v1 }
 0x397   : > { %1529 = vmatpush3.bf16.msra.mxu0 %v1622_v19 }
 0x398   : > { %1554 = vmatprep.subr.bf16.mxu0 %v1715_v1 }
 0x45d   : > { %v770_v56 = vpop.f32.mrb[4].mxu0 }
 0x45e   : > { %v1504_v57 = vpop.f32.mrb[5].mxu0 }
 0x45f   : > { %v773_v58 = vpop.f32.mrb[6].mxu0 }
 0x460   : > { %v1505_v59 = vpop.f32.mrb[7].mxu0 }
 0x465   : > { %v882_v60 = vpop.f32.mrb[8].mxu0 }
 0x466   : > { %889 = vrot.lane.b32.xlu1 %v882_v60, %s1722_s19  ;;  %v1516_v61 = vpop.f32.mrb[9].mxu0  ;;  %s1451_s19 = sshll.u32 %s1840_s0, 4  ;;  %s1651_s0 = scalar_lea.vmem %s2037_s21, 16 }
 0x467   : > { %v885_v62 = vpop.f32.mrb[10].mxu0  ;;  %s2035_s3 = scalar_lea.hbm %s2095_s18, %s1451_s19  ;;  %p1652_p11 = scmp.ne.s32.totalorder %s2037_s21, %s1651_s0 }
 0x468   : > { %v1517_v63 = vpop.f32.mrb[11].mxu0  ;;  %p1659_p1 = scmp.lt.s32.totalorder %s1657_s29, %s1651_s0 }
 0x469   : > { %p1653_p12 = pnand %p1652_p11, %p1857_p5 }
 0x46a   : > { %p1660_p2 = por %p1659_p1, %p1658_p0 }
 0x46b   : > { %p1654_p13 = pneg %p1653_p12 }
 0x46d   : > { %p1661_p3 = pnand %p1660_p2, %p1654_p13 }
 0x4d8   : > { %v890_v0 = vpop.permute.xlu1 %889 }
 0x4d9   : > { %v892_v2 = vsel %vm659_vm2, %v770_v56, %v890_v0 }
 0x4da   : > { %v893_v4 = vpack.c.bf16 %v892_v2, %v892_v2 }
 0x4dc   : > { %1523 = vmatmul.mubr.msk.bf16.vlgmr.msra.gmra.mrb[8].mxu1 %vm611_vm1, %v893_v4  ;;  %v1631_v4 = vld [vmem:[%s2091_s14] sm:$0xff]  }
 0x4dd   : > { %1550 = vmatprep.mubr.msk.bf16.mxu1 %vm1716_vm0, %v1715_v1  ;;  %1535 = vmatpush3.bf16.msra.mxu1 %v1623_v29 }
 0x4de   : > { %1536 = vmatprep.subr.bf16.mxu1 %v1715_v1 }
 0x4e1   : > { %1537 = vmatpush3.bf16.msra.mxu1 %v1624_v30 }
 0x4e2   : > { %1538 = vmatprep.subr.bf16.mxu1 %v1715_v1 }
 0x4e5   : > { %1539 = vmatpush3.bf16.msra.mxu1 %v1625_v31 }
 0x4e6   : > { %1540 = vmatprep.subr.bf16.mxu1 %v1715_v1 }
 0x4e9   : > { %1541 = vmatpush3.bf16.msra.mxu1 %v1626_v32 }
 0x4ea   : > { %1542 = vmatprep.subr.bf16.mxu1 %v1715_v1 }
 0x4ed   : > { %1543 = vmatpush3.bf16.msra.mxu1 %v1627_v33 }
 0x4ee   : > { %1544 = vmatprep.subr.bf16.mxu1 %v1715_v1 }
 0x4f1   : > { %1545 = vmatpush3.bf16.msra.mxu1 %v1628_v34 }
 0x4f2   : > { %1546 = vmatprep.subr.bf16.mxu1 %v1715_v1 }
 0x4f5   : > { %1547 = vmatpush3.bf16.msra.mxu1 %v1629_v35 }
 0x4f6   : > { %1548 = vmatprep.subr.bf16.mxu1 %v1715_v1 }
 0x4f9   : > { %1549 = vmatpush3.bf16.msra.mxu1 %v1630_v36 }
 0x5af   : > { %v954_v6 = vpop.f32.mrb[8].mxu1 }
 0x5b0   : > { %v955_v7 = vadd.f32 %v1424_v5, %v954_v6  ;;  %v1524_v8 = vpop.f32.mrb[9].mxu1  ;;  %v1632_v5 = vld [vmem:[%s2091_s14 + $0x8] sm:$0xff]  }
 0x5b1   : > { %v957_v9 = vpop.f32.mrb[10].mxu1 }
 0x5b2   : > { %v1525_v10 = vpop.f32.mrb[11].mxu1  ;;  %v960_v11 = vadd.f32 %v955_v7, %v1889_v3 }
 0x5b3   : > { %v1443_v10 = vld [vmem:[%s2089_s12] ss:$0 sm:$0xff] }
 0x5b4   : > { %v963_v12 = vsel %vm611_vm1, %v960_v11, 0.0 }
 0x5b5   : > { %964 = vadd.xlane.f32.xlu0 %v963_v12  ;;  %v1444_v12 = vld [vmem:[%s2090_s13] ss:$0 sm:$0xff] }
 0x642   : > { %v965_v13 = vpop.xlane.xlu0 %964 }
 0x643   : > { %v967_v14 = vmul.f32 0.03125, %v965_v13 }
 0x645   : > { %v968_v15 = vsub.f32 %v960_v11, %v967_v14 }
 0x647   : > { %v969_v16 = vmul.f32 %v968_v15, %v968_v15 }
 0x649   : > { %v970_v17 = vsel %vm611_vm1, %v969_v16, 0.0  ;;  %v1633_v16 = vld [vmem:[%s2093_s16] sm:$0xff]  }
 0x64a   : > { %971 = vadd.xlane.f32.xlu1 %v970_v17  ;;  %v1634_v17 = vld [vmem:[%s2093_s16 + $0x8] sm:$0xff]  }
 0x6d7   : > { %v972_v3 = vpop.xlane.xlu1 %971 }
 0x6d8   : > { %v973_v20 = vmul.f32 0.03125, %v972_v3 }
 0x6da   : > { %v974_v21 = vadd.f32 1e-12, %v973_v20 }
 0x6dc   : > { %1643 = vrsqrt.f32 %v974_v21 }
 0x6e6   : > { %v1644_v22 = vpop.eup %1643 }
 0x6e7   : > { %v976_v24 = vmul.f32 %v1644_v22, %v968_v15 }
 0x6e9   : > { %v983_v26 = vmul.f32 %v1428_v23, %v976_v24 }
 0x6eb   : > { %v990_v27 = vadd.f32 %v1429_v25, %v983_v26 }
 0x6ed   : > { %v991_v28 = vpack.c.bf16 %v990_v27, %v990_v27 }
 0x6ef   : > { %1531 = vmatmul.mubr.msk.bf16.vlgmr.msra.gmra.mrb[12].mxu0 %vm611_vm1, %v991_v28 }
 0x6f0   : > { %1558 = vmatprep.mubr.msk.bf16.mxu0 %vm1716_vm0, %v1715_v1  ;;  %1555 = vmatpush3.bf16.msra.mxu0 %v1631_v4 }
 0x6f1   : > { %1556 = vmatprep.subr.bf16.mxu0 %v1715_v1 }
 0x6f4   : > { %1557 = vmatpush3.bf16.msra.mxu0 %v1632_v5 }
 0x6f5   : > { %1562 = vmatprep.subr.bf16.mxu0 %v1715_v1 }
 0x7c2   : > { %v1052_v38 = vpop.f32.mrb[12].mxu0 }
 0x7c3   : > { %v1053_v39 = vadd.f32 %v1430_v37, %v1052_v38  ;;  %v1532_v40 = vpop.f32.mrb[13].mxu0 }
 0x7c4   : > { %v1055_v41 = vpop.f32.mrb[14].mxu0 }
 0x7c5   : > { %v1058_v42 = vmul.f32 %v1053_v39, %v1053_v39  ;;  %v1533_v43 = vpop.f32.mrb[15].mxu0 }
 0x7c7   : > { %v1059_v44 = vmul.f32 %v1058_v42, %v1053_v39 }
 0x7c9   : > { %v1060_v45 = vmul.f32 0.044715, %v1059_v44 }
 0x7cb   : > { %v1061_v46 = vadd.f32 %v1060_v45, %v1053_v39 }
 0x7cd   : > { %v1062_v47 = vmul.f32 0.7978846, %v1061_v46 }
 0x7cf   : > { %1645 = vtanh.f32 %v1062_v47 }
 0x7d9   : > { %v1646_v48 = vpop.eup %1645 }
 0x7da   : > { %v1064_v49 = vadd.f32 1.0, %v1646_v48 }
 0x7dc   : > { %v1065_v50 = vmul.f32 0.5, %v1064_v49 }
 0x7de   : > { %v1066_v51 = vmul.f32 %v1065_v50, %v1053_v39 }
 0x7e0   : > { %v1067_v52 = vpack.c.bf16 %v1066_v51, %v1066_v51 }
 0x7e2   : > { %1551 = vmatmul.mubr.bf16.vlgmr.msra.gmra.mrb[12].mxu1 %v1067_v52 }
 0x8b5   : > { %v1173_v54 = vpop.f32.mrb[12].mxu1 }
 0x8b6   : > { %v1174_v55 = vadd.f32 %v1434_v53, %v1173_v54  ;;  %v1552_v56 = vpop.f32.mrb[13].mxu1 }
 0x8b7   : > { %v1176_v57 = vpop.f32.mrb[14].mxu1 }
 0x8b8   : > { %v1553_v58 = vpop.f32.mrb[15].mxu1  ;;  %v1179_v59 = vadd.f32 %v1174_v55, %v990_v27 }
 0x8ba   : > { %v1182_v60 = vsel %vm611_vm1, %v1179_v59, 0.0 }
 0x8bb   : > { %1183 = vadd.xlane.f32.xlu0 %v1182_v60 }
 0x948   : > { %v1184_v61 = vpop.xlane.xlu0 %1183 }
 0x949   : > { %v1185_v62 = vmul.f32 0.03125, %v1184_v61 }
 0x94b   : > { %v1186_v63 = vsub.f32 %v1179_v59, %v1185_v62 }
 0x94d   : > { %v1187_v0 = vmul.f32 %v1186_v63, %v1186_v63 }
 0x94f   : > { %v1188_v2 = vsel %vm611_vm1, %v1187_v0, 0.0 }
 0x950   : > { %1189 = vadd.xlane.f32.xlu0 %v1188_v2 }
 0x9dd   : > { %v1190_v6 = vpop.xlane.xlu0 %1189 }
 0x9de   : > { %v1191_v7 = vmul.f32 0.03125, %v1190_v6 }
 0x9e0   : > { %v1192_v8 = vadd.f32 1e-12, %v1191_v7 }
 0x9e2   : > { %1647 = vrsqrt.f32 %v1192_v8 }
 0x9ec   : > { %v1648_v9 = vpop.eup %1647 }
 0x9ed   : > { %v1194_v11 = vmul.f32 %v1648_v9, %v1186_v63 }
 0x9ef   : > { %v1201_v13 = vmul.f32 %v1443_v10, %v1194_v11 }
 0x9f1   : > { %v1208_v14 = vadd.f32 %v1444_v12, %v1201_v13 }
 0x9f3   : > { %v1209_v15 = vpack.c.bf16 %v1208_v14, %v1208_v14 }
 0x9f5   : > { %1559 = vmatmul.mubr.msk.bf16.vlgmr.msra.gmra.mrb[16].mxu0 %vm611_vm1, %v1209_v15 }
 0x9f6   : > { %1566 = vmatprep.mubr.msk.bf16.mxu0 %vm1716_vm0, %v1715_v1  ;;  %1563 = vmatpush3.bf16.msra.mxu0 %v1633_v16 }
 0x9f7   : > { %1564 = vmatprep.subr.bf16.mxu0 %v1715_v1  ;;  %v1276_v1 = vld [vmem:[%s2094_s17] sm:$0x1] }
 0x9fa   : > { %1565 = vmatpush3.bf16.msra.mxu0 %v1634_v17 }
 0xac8   : > { %v1264_v19 = vpop.f32.mrb[16].mxu0 }
 0xac9   : > { %v1265_v3 = vadd.f32 %v1264_v19, %v1214_v18  ;;  %v1560_v20 = vpop.f32.mrb[17].mxu0 }
 0xaca   : > { %v1267_v21 = vpop.f32.mrb[18].mxu0 }
 0xacb   : > { %1649 = vtanh.f32 %v1265_v3  ;;  %v1561_v22 = vpop.f32.mrb[19].mxu0 }
 0xad5   : > { %v1650_v23 = vpop.eup %1649 }
 0xad6   : > { %v1271_v24 = vpack.c.bf16 %v1650_v23, %v1650_v23 }
 0xad8   : > { %1567 = vmatmul.mubr.msk.bf16.vlgmr.msra.gmra.mrb[20].mxu0 %vm611_vm1, %v1271_v24 }
 0xbab   : > { %v1326_v25 = vpop.f32.mrb[20].mxu0 }
 0xbac   : > { %v1327_v26 = vadd.f32 %v1326_v25, %v1276_v1  ;;  %v1568_v27 = vpop.f32.mrb[21].mxu0 }
 0xbad   : > { %v1329_v28 = vpop.f32.mrb[22].mxu0 }
 0xbae   : > { %1332 = vst [vmem:[%s576_s20] sm:$0x1] %v1327_v26  ;;  %v1569_v29 = vpop.f32.mrb[23].mxu0 }
 0xbaf   : > { %1664 = shalt.err (!%p1661_p3)
}
 0xbb0   : > { %s1665_s24 = scalar_lea.hbm %s2035_s3, 16  ;;  %s1669_s22 = scalar_lea.hbm %s2095_s18, 32 }
 0xbb1   : > { %p1666_p4 = scmp.ne.s32.totalorder %s2035_s3, %s1665_s24  ;;  %p1670_p9 = scmp.lt.u32.totalorder %s2035_s3, %s2095_s18 }
 0xbb2   : > { %p1671_p10 = scmp.lt.u32.totalorder %s1669_s22, %s1665_s24  ;;  %p1673_p12 = scmp.lt.u32.totalorder %s1665_s24, %s2035_s3 }
 0xbb3   : > { %p1667_p7 = pnand %p1666_p4, %p1857_p5 }
 0xbb4   : > { %p1672_p11 = por %p1671_p10, %p1670_p9 }
 0xbb5   : > { %p1668_p8 = pneg %p1667_p7 }
 0xbb6   : > { %p1674_p13 = por %p1673_p12, %p1672_p11 }
 0xbb8   : > { %p1675_p0 = pnand %p1674_p13, %p1668_p8 }
 0xbba   : > { %1678 = shalt.err (!%p1675_p0)
}
 0xbbb   : > { %1570 = dma.vmem_to_hbm [thread:$0]  (%p1857_p5), %s2037_s21, 16, %s2035_s3, %s1334_s26  }
 0xbbc PF: > { %p1576_p1 = scmp.ge.s32.totalorder %s1713_s30, 2  ;;  %s1358_s0 = sand.u32 1, %s1701_s27  }
 0xbbd   : > { %s1359_s29 = scalar_lea.sflag [#allocation3], %s1358_s0 }
 0xbbe   : > { %p1573_p2 = pnand %p1576_p1, %p1861_p6 }
 0xbc0   : > { %1696 = dma.done.wait (!%p1573_p2), %s1359_s29, 16  }
 0xbc1   : > { %1698 = vsyncadd (!%p1573_p2), %s1359_s29, 4294967280  ;;  %s2113_s24 = sld [smem:[#allocation5_spill]]  ;;  %s2114_s29 = sld [smem:[#allocation6_spill]] }
 0xbc2   : > { %p28_p3 = scmp.ge.s32.totalorder %s1844_s1, 4   ;;  %s2115_s27 = smov %s1705_s28 }
 0xbc3   : > { %s2117_s30 = smov %s1844_s1 }
 0xbc4   :  { %30 = sbr.rel (!%p28_p3) target bundleno = 9 (0x9), region = 130 }
 0xbc7   : > { %s2116_s28 = smov %s2113_s24 }
 0xbcb   :  { %1363 = vsyncpa [#allocation3], 1 }
 0xbcc   :  { %1365 = vsyncpa [#allocation3 + $0x1], 1 }

// kernel: bert_classifier_forward.2
= control target key start
LH: loop header
LB: loop body
LE: loop exit
PB: predicated region body
PF: predicated region fallthrough
CT: control target
= control target key end

     0   :  { %s1530_s21 = smov 0   ;;  %s1690_s0 = inlined_call_operand.vmem [shape: f32[2,8,32], index: 0, kind: input, shape index: {}]   ;;  %s1691_s1 = inlined_call_operand.vmem [shape: f32[2,1,8], index: 1, kind: input, shape index: {}]   ;;  %s1692_s2 = inlined_call_operand.vmem [shape: f32[1,32], index: 2, kind: input, shape index: {}]   ;;  %s1693_s3 = inlined_call_operand.vmem [shape: f32[1,32], index: 3, kind: input, shape index: {}]   ;;  %s1694_s4 = inlined_call_operand.vmem [shape: bf16[32,96], index: 4, kind: input, shape index: {}]   ;;  %s1695_s5 = inlined_call_operand.vmem [shape: f32[1,96], index: 5, kind: input, shape index: {}]   ;;  %s1696_s6 = inlined_call_operand.vmem [shape: bf16[32,32], index: 6, kind: input, shape index: {}]   ;;  %s1697_s7 = inlined_call_operand.vmem [shape: f32[1,32], index: 7, kind: input, shape index: {}]   ;;  %s1698_s8 = inlined_call_operand.vmem [shape: f32[1,32], index: 8, kind: input, shape index: {}]   ;;  %s1699_s9 = inlined_call_operand.vmem [shape: f32[1,32], index: 9, kind: input, shape index: {}]   ;;  %s1700_s10 = inlined_call_operand.vmem [shape: bf16[32,128], index: 10, kind: input, shape index: {}]   ;;  %s1701_s11 = inlined_call_operand.vmem [shape: f32[1,128], index: 11, kind: input, shape index: {}]   ;;  %s1702_s12 = inlined_call_operand.vmem [shape: bf16[128,32], index: 12, kind: input, shape index: {}]   ;;  %s1703_s13 = inlined_call_operand.vmem [shape: f32[1,32], index: 13, kind: input, shape index: {}]   ;;  %s1704_s14 = inlined_call_operand.vmem [shape: f32[1,32], index: 14, kind: input, shape index: {}]   ;;  %s1705_s15 = inlined_call_operand.vmem [shape: f32[1,32], index: 15, kind: input, shape index: {}]   ;;  %s1706_s16 = inlined_call_operand.vmem [shape: f32[2,8,32], index: 16, kind: output, shape index: {}]  }
   0x1   :  { %1707 = sst [smem:[#allocation2_spill]] %s1690_s0 }
   0x2 LB: > { %s1248_s22 = sadd.s32 4294967295, %s1435_s21   ;;  %p1252_p0 = scmp.ge.s32.totalorder %s1435_s21, 1  ;;  %s1435_s21 = sphi %s1530_s21, %s26_s21  }
   0x3   : > { %p469_p1 = scmp.lt.s32.totalorder %s1435_s21, 3 }
   0x5   : > { %p470_p2 = pnand %p1252_p0, %p469_p1 }
   0x6   : > { %p520_p3 = scmp.lt.s32.totalorder (!%p470_p2), %s1248_s22, 1  ;;  %vm535_vm0 = vcmask (!%p470_p2), 261120   ;;  %s1708_s26 = sld [smem:[#allocation2_spill]] (!%p470_p2)  ;;  %v1399_v7 = vld [vmem:[%s1694_s4] sm:$0xff] (!%p470_p2)   ;;  %v1437_v8 = vmov (!%p470_p2), 0.0   ;;  %v1400_v9 = vld [vmem:[%s1694_s4 + $0x8] sm:$0xff] (!%p470_p2)  }
   0x7   : > { %473 = sbr.rel (%p470_p2) target bundleno = 2846 (0xb1e), region = 84  ;;  %1315 = vmatprep.subr.bf16.mxu0 (!%p470_p2), %v1437_v8  ;;  %1335 = vmatprep.subr.bf16.mxu1 (!%p470_p2), %v1437_v8  ;;  %vm1438_vm1 = vmmov (!%p470_p2), 0   ;;  %v1255_v14 = vld [vmem:[%s1692_s2] ss:$0 sm:$0xff] (!%p470_p2)  ;;  %s1441_s28 = smov (!%p470_p2), 80   ;;  %vm636_vm2 = vcmask (!%p470_p2), 130048  }
   0x8   : > { %1316 = vmatpush3.bf16.msra.mxu0 (!%p470_p2), %v1399_v7  ;;  %1319 = vmatprep.mubr.msk.bf16.mxu0 (!%p470_p2), %vm1438_vm1, %v1437_v8  ;;  %v1256_v16 = vld [vmem:[%s1693_s3] ss:$0 sm:$0xff] (!%p470_p2)  ;;  %vm691_vm3 = vcmask (!%p470_p2), 64512   ;;  %s1442_s17 = smov (!%p470_p2), 48   ;;  %s1443_s18 = smov (!%p470_p2), 64   ;;  %vm709_vm4 = vcmask (!%p470_p2), 1043456  }
   0x9   : > { %1317 = vmatprep.subr.bf16.mxu0 (!%p470_p2), %v1437_v8  ;;  %1337 = vmatprep.mubr.msk.bf16.mxu1 (!%p470_p2), %vm1438_vm1, %v1437_v8  ;;  %v1257_v20 = vld [vmem:[%s1695_s5] ss:$0 sm:$0xff] (!%p470_p2) }
   0xc   : > { %1318 = vmatpush3.bf16.msra.mxu0 (!%p470_p2), %v1400_v9 }
   0xd   : > { %1323 = vmatprep.subr.bf16.mxu0 (!%p470_p2), %v1437_v8 }
   0xe   : > { %s1710_s22 = smov (!%p520_p3, %s1248_s22), 1 }
   0xf   : > { %s1253_s23 = sshll.u32 %s1710_s22, 3  ;;  %s526_s0 = scalar_lea.vmem %s1691_s1, %s1710_s22 }
  0x10   : > { %s523_s27 = scalar_lea.vmem %s1708_s26, %s1253_s23  ;;  %s1439_s26 = smov 112   ;;  %v1262_v33 = vld [vmem:[%s526_s0] ss:$0 sm:$0xff] }
  0x11   : > { %v532_v0 = vld [vmem:[%s523_s27] sm:$0xff]  ;;  %s1440_s27 = smov 96  }
  0x12   : > { %v536_v1 = vsel %vm535_vm0, %v532_v0, 0.0 }
  0x13   : > { %537 = vadd.xlane.f32.xlu0 %v536_v1 }
  0xa0   : > { %v538_v2 = vpop.xlane.xlu0 %537 }
  0xa1   : > { %v540_v3 = vmul.f32 0.03125, %v538_v2 }
  0xa3   : > { %v541_v4 = vsub.f32 %v532_v0, %v540_v3 }
  0xa5   : > { %v542_v5 = vmul.f32 %v541_v4, %v541_v4 }
  0xa7   : > { %v543_v6 = vsel %vm535_vm0, %v542_v5, 0.0  ;;  %v1401_v5 = vld [vmem:[%s1696_s6] sm:$0xff]  }
  0xa8   : > { %544 = vadd.xlane.f32.xlu0 %v543_v6  ;;  %v1402_v6 = vld [vmem:[%s1696_s6 + $0x8] sm:$0xff]  }
 0x135   : > { %v545_v10 = vpop.xlane.xlu0 %544 }
 0x136   : > { %v546_v11 = vmul.f32 0.03125, %v545_v10 }
 0x138   : > { %v547_v12 = vadd.f32 1e-12, %v546_v11 }
 0x13a   : > { %1413 = vrsqrt.f32 %v547_v12 }
 0x144   : > { %v1414_v13 = vpop.eup %1413 }
 0x145   : > { %v549_v15 = vmul.f32 %v1414_v13, %v541_v4 }
 0x147   : > { %v556_v17 = vmul.f32 %v1255_v14, %v549_v15 }
 0x149   : > { %v1568_v18 = vadd.f32 %v1256_v16, %v556_v17 }
 0x14b   : > { %v565_v19 = vpack.c.bf16 %v1568_v18, %v1568_v18 }
 0x14d   : > { %1320 = vmatmul.mubr.msk.bf16.vlgmr.msra.gmra.mrb[0].mxu0 %vm535_vm0, %v565_v19 }
 0x14e   : > { %1325 = vmatprep.mubr.msk.bf16.mxu0 %vm1438_vm1, %v1437_v8 }
 0x220   : > { %v626_v21 = vpop.f32.mrb[0].mxu0 }
 0x221   : > { %v627_v22 = vadd.f32 %v1257_v20, %v626_v21  ;;  %v1321_v23 = vpop.f32.mrb[1].mxu0  ;;  %v1266_v20 = vld [vmem:[%s1697_s7] ss:$0 sm:$0xff] }
 0x222   : > { %v629_v24 = vpop.f32.mrb[2].mxu0 }
 0x223   : > { %v632_v25 = vpack.c.bf16 %v627_v22, %v627_v22  ;;  %v1322_v26 = vpop.f32.mrb[3].mxu0 }
 0x225   : > { %753 = vrot.lane.b32.xlu0 %v632_v25, %s1439_s26  ;;  %634 = vrot.lane.b32.xlu1 %v632_v25, %s1440_s27  ;;  %s1444_s26 = smov 16   ;;  %s530_s27 = scalar_lea.vmem %s1706_s16, %s1253_s23 }
 0x229   : > { %755 = vrot.lane.b32.xlu1 %v632_v25, %s1441_s28 }
 0x297   : > { %v635_v27 = vpop.permute.xlu1 %634  ;;  %v754_v31 = vpop.permute.xlu0 %753 }
 0x298   : > { %v641_v28 = vsel %vm636_vm2, %v635_v27, 0 }
 0x299   : > { %1324 = vmatpush3.bf16.xpose.msra.mxu0 %v641_v28 }
 0x29a   : > { %1329 = vmatprep.subr.bf16.mxu0 %v1437_v8 }
 0x29b   : > { %v756_v29 = vpop.permute.xlu1 %755 }
 0x29c   : > { %v761_v30 = vsel %vm636_vm2, %v756_v29, 0 }
 0x29d   : > { %1336 = vmatpush3.bf16.xpose.msra.mxu1 %v761_v30 }
 0x29e   : > { %1347 = vmatprep.subr.bf16.mxu1 %v1437_v8 }
 0x2a0   : > { %1326 = vmatmul.mubr.msk.bf16.vlgmr.msra.gmra.mrb[4].mxu0 %vm636_vm2, %v632_v25 }
 0x2a1   : > { %1331 = vmatprep.mubr.msk.bf16.mxu0 %vm1438_vm1, %v1437_v8 }
 0x2a4   : > { %1338 = vmatmul.mubr.msk.bf16.vlgmr.msra.gmra.mrb[0].mxu1 %vm636_vm2, %v754_v31 }
 0x2a5   : > { %1351 = vmatprep.mubr.msk.bf16.mxu1 %vm1438_vm1, %v1437_v8  ;;  %1348 = vmatpush3.bf16.msra.mxu1 %v1401_v5 }
 0x2a6   : > { %1349 = vmatprep.subr.bf16.mxu1 %v1437_v8 }
 0x2a9   : > { %1350 = vmatpush3.bf16.msra.mxu1 %v1402_v6 }
 0x2aa   : > { %1363 = vmatprep.subr.bf16.mxu1 %v1437_v8 }
 0x373   : > { %v677_v32 = vpop.f32.mrb[4].mxu0 }
 0x374   : > { %v683_v34 = vmul.f32 0.25, %v677_v32  ;;  %v1327_v35 = vpop.f32.mrb[5].mxu0 }
 0x375   : > { %v680_v36 = vpop.f32.mrb[6].mxu0 }
 0x376   : > { %v1328_v37 = vpop.f32.mrb[7].mxu0  ;;  %v690_v38 = vadd.f32 %v1262_v33, %v683_v34  ;;  %v1404_v34 = vld [vmem:[%s1700_s10 + $0x8] sm:$0xff]  }
 0x377   : > { %v797_v39 = vpop.f32.mrb[0].mxu1 }
 0x378   : > { %v803_v40 = vmul.f32 0.25, %v797_v39  ;;  %v1339_v41 = vpop.f32.mrb[1].mxu1  ;;  %v692_v42 = vsel %vm691_vm3, %v690_v38, -inf }
 0x379   : > { %v800_v43 = vpop.f32.mrb[2].mxu1  ;;  %693 = vmax.xlane.f32.xlu1 %v692_v42 }
 0x37a   : > { %v1340_v44 = vpop.f32.mrb[3].mxu1  ;;  %v804_v45 = vadd.f32 %v1262_v33, %v803_v40  ;;  %v1403_v33 = vld [vmem:[%s1700_s10] sm:$0xff]  }
 0x37b   : > { %v1271_v40 = vld [vmem:[%s1699_s9] ss:$0 sm:$0xff] }
 0x37c   : > { %v805_v46 = vsel %vm691_vm3, %v804_v45, -inf  ;;  %v1405_v44 = vld [vmem:[%s1702_s12] sm:$0xff]  }
 0x37d   : > { %806 = vmax.xlane.f32.xlu0 %v805_v46  ;;  %v1407_v46 = vld [vmem:[%s1702_s12 + $0x10] sm:$0xff]  }
 0x393   : > { %817 = vrot.lane.b32.xlu0 %v632_v25, %s1442_s17 }
 0x406   : > { %v694_v47 = vpop.xlane.xlu1 %693 }
 0x407   : > { %v695_v48 = vsub.f32 %v690_v38, %v694_v47  ;;  %v1270_v38 = vld [vmem:[%s1698_s8] ss:$0 sm:$0xff]  ;;  %v1408_v47 = vld [vmem:[%s1702_s12 + $0x18] sm:$0xff]  }
 0x409   : > { %v696_v49 = vmul.f32 1.442695, %v695_v48  ;;  %v1409_v48 = vld [vmem:[%s1702_s12 + $0x20] sm:$0xff]  }
 0x40a   : > { %v807_v50 = vpop.xlane.xlu0 %806 }
 0x40b   : > { %1415 = vpow2.f32 %v696_v49  ;;  %v808_v51 = vsub.f32 %v804_v45, %v807_v50  ;;  %v1406_v45 = vld [vmem:[%s1702_s12 + $0x8] sm:$0xff]   ;;  %v1411_v50 = vld [vmem:[%s1702_s12 + $0x30] sm:$0xff]  }
 0x40c   : > { %v1410_v49 = vld [vmem:[%s1702_s12 + $0x28] sm:$0xff]  }
 0x40d   : > { %v809_v52 = vmul.f32 1.442695, %v808_v51  ;;  %v1412_v51 = vld [vmem:[%s1702_s12 + $0x38] sm:$0xff]  }
 0x40e   : > { %v818_v63 = vpop.permute.xlu0 %817 }
 0x40f   : > { %1417 = vpow2.f32 %v809_v52  ;;  %v823_v2 = vsel %vm709_vm4, %v818_v63, 0  ;;  %v1272_v52 = vld [vmem:[%s1701_s11] ss:$0 sm:$0xff] }
 0x415   : > { %v1416_v53 = vpop.eup %1415 }
 0x416   : > { %v698_v54 = vsel %vm691_vm3, %v1416_v53, 0.0 }
 0x417   : > { %699 = vadd.xlane.f32.xlu1 %v698_v54 }
 0x419   : > { %v1418_v55 = vpop.eup %1417 }
 0x41a   : > { %v811_v56 = vsel %vm691_vm3, %v1418_v55, 0.0 }
 0x41b   : > { %812 = vadd.xlane.f32.xlu1 %v811_v56 }
 0x42c   : > { %704 = vrot.lane.b32.xlu1 %v632_v25, %s1443_s18 }
 0x4a4   : > { %v700_v57 = vpop.xlane.xlu1 %699 }
 0x4a5   : > { %1419 = vrcp.f32 %v700_v57 }
 0x4a8   : > { %v813_v58 = vpop.xlane.xlu1 %812 }
 0x4a9   : > { %1421 = vrcp.f32 %v813_v58 }
 0x4ac   : > { %v705_v59 = vpop.permute.xlu1 %704 }
 0x4ad   : > { %v711_v60 = vsel %vm709_vm4, %v705_v59, 0 }
 0x4ae   : > { %1330 = vmatpush3.bf16.msra.mxu0 %v711_v60 }
 0x4af   : > { %v1420_v61 = vpop.eup %1419  ;;  %1341 = vmatprep.subr.bf16.mxu0 %v1437_v8 }
 0x4b0   : > { %v702_v62 = vmul.f32 %v1420_v61, %v1416_v53 }
 0x4b2   : > { %v703_v0 = vpack.c.bf16 %v702_v62, %v702_v62 }
 0x4b3   : > { %v1422_v1 = vpop.eup %1421 }
 0x4b4   : > { %1332 = vmatmul.mubr.msk.bf16.vlgmr.msra.gmra.mrb[8].mxu0 %vm691_vm3, %v703_v0  ;;  %v815_v3 = vmul.f32 %v1422_v1, %v1418_v55 }
 0x4b5   : > { %1342 = vmatpush3.bf16.msra.mxu0 %v823_v2  ;;  %1343 = vmatprep.mubr.msk.bf16.mxu0 %vm1438_vm1, %v1437_v8 }
 0x4b6   : > { %1355 = vmatprep.subr.bf16.mxu0 %v1437_v8  ;;  %v816_v4 = vpack.c.bf16 %v815_v3, %v815_v3  ;;  %v1276_v3 = vld [vmem:[%s1703_s13] ss:$0 sm:$0xff] }
 0x4bc   : > { %1344 = vmatmul.mubr.msk.bf16.vlgmr.msra.gmra.mrb[12].mxu0 %vm691_vm3, %v816_v4 }
 0x4bd   : > { %1359 = vmatprep.mubr.msk.bf16.mxu0 %vm1438_vm1, %v1437_v8  ;;  %1356 = vmatpush3.bf16.msra.mxu0 %v1403_v33 }
 0x4be   : > { %1357 = vmatprep.subr.bf16.mxu0 %v1437_v8 }
 0x4c1   : > { %1358 = vmatpush3.bf16.msra.mxu0 %v1404_v34 }
 0x587   : > { %v747_v7 = vpop.f32.mrb[8].mxu0 }
 0x588   : > { %v1333_v9 = vpop.f32.mrb[9].mxu0 }
 0x589   : > { %v750_v10 = vpop.f32.mrb[10].mxu0 }
 0x58a   : > { %v1334_v11 = vpop.f32.mrb[11].mxu0 }
 0x58f   : > { %v859_v12 = vpop.f32.mrb[12].mxu0 }
 0x590   : > { %866 = vrot.lane.b32.xlu1 %v859_v12, %s1444_s26  ;;  %v1345_v13 = vpop.f32.mrb[13].mxu0 }
 0x591   : > { %v862_v14 = vpop.f32.mrb[14].mxu0 }
 0x592   : > { %v1346_v15 = vpop.f32.mrb[15].mxu0 }
 0x602   : > { %v867_v16 = vpop.permute.xlu1 %866 }
 0x603   : > { %v869_v17 = vsel %vm636_vm2, %v747_v7, %v867_v16 }
 0x604   : > { %v870_v19 = vpack.c.bf16 %v869_v17, %v869_v17 }
 0x606   : > { %1352 = vmatmul.mubr.msk.bf16.vlgmr.msra.gmra.mrb[4].mxu1 %vm535_vm0, %v870_v19 }
 0x607   : > { %1379 = vmatprep.mubr.msk.bf16.mxu1 %vm1438_vm1, %v1437_v8  ;;  %1364 = vmatpush3.bf16.msra.mxu1 %v1405_v44 }
 0x608   : > { %1365 = vmatprep.subr.bf16.mxu1 %v1437_v8 }
 0x60b   : > { %1366 = vmatpush3.bf16.msra.mxu1 %v1406_v45 }
 0x60c   : > { %1367 = vmatprep.subr.bf16.mxu1 %v1437_v8 }
 0x60f   : > { %1368 = vmatpush3.bf16.msra.mxu1 %v1407_v46 }
 0x610   : > { %1369 = vmatprep.subr.bf16.mxu1 %v1437_v8 }
 0x613   : > { %1370 = vmatpush3.bf16.msra.mxu1 %v1408_v47 }
 0x614   : > { %1371 = vmatprep.subr.bf16.mxu1 %v1437_v8 }
 0x617   : > { %1372 = vmatpush3.bf16.msra.mxu1 %v1409_v48 }
 0x618   : > { %1373 = vmatprep.subr.bf16.mxu1 %v1437_v8 }
 0x61b   : > { %1374 = vmatpush3.bf16.msra.mxu1 %v1410_v49 }
 0x61c   : > { %1375 = vmatprep.subr.bf16.mxu1 %v1437_v8 }
 0x61f   : > { %1376 = vmatpush3.bf16.msra.mxu1 %v1411_v50 }
 0x620   : > { %1377 = vmatprep.subr.bf16.mxu1 %v1437_v8 }
 0x623   : > { %1378 = vmatpush3.bf16.msra.mxu1 %v1412_v51 }
 0x6d9   : > { %v931_v21 = vpop.f32.mrb[4].mxu1 }
 0x6da   : > { %v932_v22 = vadd.f32 %v1266_v20, %v931_v21  ;;  %v1353_v23 = vpop.f32.mrb[5].mxu1 }
 0x6db   : > { %v934_v24 = vpop.f32.mrb[6].mxu1 }
 0x6dc   : > { %v1354_v25 = vpop.f32.mrb[7].mxu1  ;;  %v937_v26 = vadd.f32 %v932_v22, %v1568_v18  ;;  %v1285_v22 = vld [vmem:[%s1704_s14] ss:$0 sm:$0xff] }
 0x6dd   : > { %v1286_v24 = vld [vmem:[%s1705_s15] ss:$0 sm:$0xff] }
 0x6de   : > { %v940_v27 = vsel %vm535_vm0, %v937_v26, 0.0 }
 0x6df   : > { %941 = vadd.xlane.f32.xlu1 %v940_v27 }
 0x76c   : > { %v942_v28 = vpop.xlane.xlu1 %941 }
 0x76d   : > { %v943_v29 = vmul.f32 0.03125, %v942_v28 }
 0x76f   : > { %v944_v30 = vsub.f32 %v937_v26, %v943_v29 }
 0x771   : > { %v945_v31 = vmul.f32 %v944_v30, %v944_v30 }
 0x773   : > { %v946_v32 = vsel %vm535_vm0, %v945_v31, 0.0 }
 0x774   : > { %947 = vadd.xlane.f32.xlu0 %v946_v32 }
 0x801   : > { %v948_v18 = vpop.xlane.xlu0 %947 }
 0x802   : > { %v949_v35 = vmul.f32 0.03125, %v948_v18 }
 0x804   : > { %v950_v36 = vadd.f32 1e-12, %v949_v35 }
 0x806   : > { %1423 = vrsqrt.f32 %v950_v36 }
 0x810   : > { %v1424_v37 = vpop.eup %1423 }
 0x811   : > { %v952_v39 = vmul.f32 %v1424_v37, %v944_v30 }
 0x813   : > { %v959_v41 = vmul.f32 %v1270_v38, %v952_v39 }
 0x815   : > { %v966_v42 = vadd.f32 %v1271_v40, %v959_v41 }
 0x817   : > { %v967_v43 = vpack.c.bf16 %v966_v42, %v966_v42 }
 0x819   : > { %1360 = vmatmul.mubr.msk.bf16.vlgmr.msra.gmra.mrb[16].mxu0 %vm535_vm0, %v967_v43 }
 0x8ec   : > { %v1028_v53 = vpop.f32.mrb[16].mxu0 }
 0x8ed   : > { %v1029_v54 = vadd.f32 %v1272_v52, %v1028_v53  ;;  %v1361_v55 = vpop.f32.mrb[17].mxu0 }
 0x8ee   : > { %v1031_v56 = vpop.f32.mrb[18].mxu0 }
 0x8ef   : > { %v1034_v57 = vmul.f32 %v1029_v54, %v1029_v54  ;;  %v1362_v58 = vpop.f32.mrb[19].mxu0 }
 0x8f1   : > { %v1035_v59 = vmul.f32 %v1034_v57, %v1029_v54 }
 0x8f3   : > { %v1036_v60 = vmul.f32 0.044715, %v1035_v59 }
 0x8f5   : > { %v1037_v61 = vadd.f32 %v1036_v60, %v1029_v54 }
 0x8f7   : > { %v1038_v62 = vmul.f32 0.7978846, %v1037_v61 }
 0x8f9   : > { %1425 = vtanh.f32 %v1038_v62 }
 0x903   : > { %v1426_v63 = vpop.eup %1425 }
 0x904   : > { %v1040_v0 = vadd.f32 1.0, %v1426_v63 }
 0x906   : > { %v1041_v1 = vmul.f32 0.5, %v1040_v0 }
 0x908   : > { %v1042_v8 = vmul.f32 %v1041_v1, %v1029_v54 }
 0x90a   : > { %v1043_v2 = vpack.c.bf16 %v1042_v8, %v1042_v8 }
 0x90c   : > { %1380 = vmatmul.mubr.bf16.vlgmr.msra.gmra.mrb[8].mxu1 %v1043_v2 }
 0x9df   : > { %v1149_v4 = vpop.f32.mrb[8].mxu1 }
 0x9e0   : > { %v1150_v5 = vadd.f32 %v1276_v3, %v1149_v4  ;;  %v1381_v6 = vpop.f32.mrb[9].mxu1 }
 0x9e1   : > { %v1152_v7 = vpop.f32.mrb[10].mxu1 }
 0x9e2   : > { %v1382_v9 = vpop.f32.mrb[11].mxu1  ;;  %v1155_v10 = vadd.f32 %v1150_v5, %v966_v42 }
 0x9e4   : > { %v1158_v11 = vsel %vm535_vm0, %v1155_v10, 0.0 }
 0x9e5   : > { %1159 = vadd.xlane.f32.xlu1 %v1158_v11 }
 0xa72   : > { %v1160_v12 = vpop.xlane.xlu1 %1159 }
 0xa73   : > { %v1161_v13 = vmul.f32 0.03125, %v1160_v12 }
 0xa75   : > { %v1162_v14 = vsub.f32 %v1155_v10, %v1161_v13 }
 0xa77   : > { %v1163_v15 = vmul.f32 %v1162_v14, %v1162_v14 }
 0xa79   : > { %v1164_v16 = vsel %vm535_vm0, %v1163_v15, 0.0 }
 0xa7a   : > { %1165 = vadd.xlane.f32.xlu1 %v1164_v16 }
 0xb07   : > { %v1166_v17 = vpop.xlane.xlu1 %1165 }
 0xb08   : > { %v1167_v19 = vmul.f32 0.03125, %v1166_v17 }
 0xb0a   : > { %v1168_v20 = vadd.f32 1e-12, %v1167_v19 }
 0xb0c   : > { %1427 = vrsqrt.f32 %v1168_v20 }
 0xb16   : > { %v1428_v21 = vpop.eup %1427 }
 0xb17   : > { %v1170_v23 = vmul.f32 %v1428_v21, %v1162_v14 }
 0xb19   : > { %v1177_v25 = vmul.f32 %v1285_v22, %v1170_v23 }
 0xb1b   : > { %v1184_v26 = vadd.f32 %v1286_v24, %v1177_v25 }
 0xb1d   : > { %1185 = vst.msk [vmem:[%s530_s27] sm:$0xff] %vm535_vm0, %v1184_v26 }
 0xb1e PF: > { %s26_s21 = sadd.s32 1, %s1435_s21  }
 0xb1f   : > { %p23_p4 = scmp.ge.s32.totalorder %s26_s21, 4  }
 0xb21   :  { %25 = sbr.rel (!%p23_p4) target bundleno = 2 (0x2), region = 117 }

</bundles_post_ra>
